<compile_context>
chip_gen: v7x
topology: tpu7x:2x2x1
jax: 0.10.0
libtpu: 0.0.40
codegen_flags: <defaults>
</compile_context>

<pallas_src>
import functools
import math

import jax
import jax.numpy as jnp
from jax import lax
from jax.experimental import pallas as pl
from jax.experimental.pallas import tpu as pltpu

LANE = 128


# ------------------------------ small helpers -------------------------------

def _round_up(x, m):
    return ((x + m - 1) // m) * m


def _m_tiling(m, cap=128):
    """Pick (padded_M, tile_M) with padded_M % tile_M == 0 and tile_M <= cap."""
    if m >= cap:
        return _round_up(m, cap), cap
    mp = _round_up(max(m, 8), 8)
    return mp, mp


def _pad_last(x, n):
    pad = n - x.shape[-1]
    if pad == 0:
        return x
    return jnp.pad(x, [(0, 0)] * (x.ndim - 1) + [(0, pad)])


def _pad2(m, rows, cols):
    return jnp.pad(m, ((0, rows - m.shape[0]), (0, cols - m.shape[1])))


# ----------------------- fused conv + maxpool + ReLU -------------------------

def _conv_pool_relu_kernel(x_ref, w_ref, b_ref, o_ref):
    # x_ref: (4, tm, Kp) -- im2col patches of the four 2x2-pool corners.
    # One resident weight tile, four full MXU passes, max-reduce (= max-pool),
    # bias + ReLU epilogue.  All operands 2-D and lane-dense.
    w = w_ref[...]
    acc = jnp.dot(x_ref[0], w, preferred_element_type=jnp.float32)
    for i in range(1, 4):
        acc = jnp.maximum(
            acc, jnp.dot(x_ref[i], w, preferred_element_type=jnp.float32))
    o_ref[...] = jnp.maximum(acc + b_ref[...], 0.0)


def conv_pool_relu(slabs, w, b):
    """slabs: (4, M, Kp) corner patches; w: (Kp, Cp); b: (1, Cp) -> (M, Cp)."""
    _, m, kp = slabs.shape
    cp = w.shape[1]
    mp, tm = _m_tiling(m)
    if mp != m:
        slabs = jnp.pad(slabs, ((0, 0), (0, mp - m), (0, 0)))
    out = pl.pallas_call(
        _conv_pool_relu_kernel,
        out_shape=jax.ShapeDtypeStruct((mp, cp), jnp.float32),
        grid=(mp // tm,),
        in_specs=[
            pl.BlockSpec((4, tm, kp), lambda i: (0, i, 0)),
            pl.BlockSpec((kp, cp), lambda i: (0, 0)),
            pl.BlockSpec((1, cp), lambda i: (0, 0)),
        ],
        out_specs=pl.BlockSpec((tm, cp), lambda i: (i, 0)),
        compiler_params=pltpu.CompilerParams(dimension_semantics=("parallel",)),
    )(slabs, w, b)
    return out[:m] if mp != m else out


# ------------------------------ fused classifier -----------------------------

def _head_kernel(x_ref, w1_ref, b1_ref, w2_ref, b2_ref, o_ref, *, n_classes):
    h = jnp.dot(x_ref[...], w1_ref[...], preferred_element_type=jnp.float32)
    h = jnp.maximum(h + b1_ref[...], 0.0)
    # TODO(synk): F.dropout is identity in eval mode; training-mode RNG omitted.
    logits = jnp.dot(h, w2_ref[...], preferred_element_type=jnp.float32)
    logits = logits + b2_ref[...]
    col = lax.broadcasted_iota(jnp.int32, logits.shape, 1)
    logits = jnp.where(col < n_classes, logits, jnp.float32(-1e30))
    m = jnp.max(logits, axis=-1, keepdims=True)
    s = logits - m
    lse = jnp.log(jnp.sum(jnp.exp(s), axis=-1, keepdims=True))
    o_ref[...] = s - lse


def head_fused(x, w1, b1, w2, b2, *, n_classes):
    """Fused fc1 + ReLU + fc2 + log_softmax over lane-padded weights."""
    m, k = x.shape
    hid = w1.shape[1]
    cp = w2.shape[1]
    mp, tm = _m_tiling(m)
    if mp != m:
        x = jnp.pad(x, ((0, mp - m), (0, 0)))
    out = pl.pallas_call(
        functools.partial(_head_kernel, n_classes=n_classes),
        out_shape=jax.ShapeDtypeStruct((mp, cp), jnp.float32),
        grid=(mp // tm,),
        in_specs=[
            pl.BlockSpec((tm, k), lambda i: (i, 0)),
            pl.BlockSpec((k, hid), lambda i: (0, 0)),
            pl.BlockSpec((1, hid), lambda i: (0, 0)),
            pl.BlockSpec((hid, cp), lambda i: (0, 0)),
            pl.BlockSpec((1, cp), lambda i: (0, 0)),
        ],
        out_specs=pl.BlockSpec((tm, cp), lambda i: (i, 0)),
        compiler_params=pltpu.CompilerParams(dimension_semantics=("parallel",)),
    )(x, w1, b1, w2, b2)
    return out[:m, :n_classes]


# -------------------------------- XLA glue -----------------------------------

def im2col_pool_slabs(x, k):
    """x: (N,H,W,C) -> ((4, N*Hp*Wp, k*k*C), (Hp, Wp)).

    Slab s = 2*dy + dx holds im2col patches for conv positions (2i+dy, 2j+dx),
    i.e. the four corners of each 2x2 max-pool window, rows in (n, i, j) order;
    patch element order is (ky, kx, c).
    """
    # TODO(synk): patch extraction / parity split stays in XLA; an in-kernel
    # accumulation over (ky, kx) shifts would avoid the k*k-duplicated HBM copy
    # at large batches.
    n, h, w, c = x.shape
    ho, wo = h - k + 1, w - k + 1
    hp, wp = ho // 2, wo // 2
    cols = [x[:, dy:dy + ho, dx:dx + wo, :] for dy in range(k) for dx in range(k)]
    patches = jnp.stack(cols, axis=3).reshape(n, ho, wo, k * k * c)
    slabs = jnp.stack(
        [patches[:, dy::2, dx::2, :] for dy in (0, 1) for dx in (0, 1)], axis=0)
    return slabs.reshape(4, n * hp * wp, k * k * c), (hp, wp)


def conv_weight_to_mat(w):
    """PyTorch (O, Cin, kH, kW) -> (kH*kW*Cin, O), matching im2col patch order."""
    o, cin, kh, kw = w.shape
    return jnp.transpose(w, (2, 3, 1, 0)).reshape(kh * kw * cin, o)


def init_params(key):
    ks = jax.random.split(key, 8)

    def u(k, shape, fan_in):
        bound = 1.0 / math.sqrt(fan_in)
        return jax.random.uniform(k, shape, jnp.float32, -bound, bound)

    return {
        "conv1_w": u(ks[0], (5, 1, 5, 5), 1 * 25),
        "conv1_b": u(ks[1], (5,), 1 * 25),
        "conv2_w": u(ks[2], (10, 5, 5, 5), 5 * 25),
        "conv2_b": u(ks[3], (10,), 5 * 25),
        "fc1_w": u(ks[4], (50, 160), 160),
        "fc1_b": u(ks[5], (50,), 160),
        "fc2_w": u(ks[6], (10, 50), 50),
        "fc2_b": u(ks[7], (10,), 50),
    }


def prepare_params(p):
    """One-time layout prep: matmul-layout weights, zero-padded to 128 lanes."""
    return {
        "conv1_w": _pad2(conv_weight_to_mat(p["conv1_w"]), LANE, LANE),   # K=25 ->128
        "conv1_b": _pad2(p["conv1_b"][None, :], 1, LANE),
        "conv2_w": _pad2(conv_weight_to_mat(p["conv2_w"]), LANE, LANE),   # K=125->128
        "conv2_b": _pad2(p["conv2_b"][None, :], 1, LANE),
        "fc1_w": _pad2(p["fc1_w"].T, 2 * LANE, LANE),                     # K=160->256
        "fc1_b": _pad2(p["fc1_b"][None, :], 1, LANE),
        "fc2_w": _pad2(p["fc2_w"].T, LANE, LANE),
        "fc2_b": _pad2(p["fc2_b"][None, :], 1, LANE),
    }


def forward(pp, x_nchw):
    n = x_nchw.shape[0]
    x = jnp.transpose(x_nchw, (0, 2, 3, 1)).astype(jnp.float32)      # NHWC (N,28,28,1)

    # conv1 (1->5, k=5) + max_pool2d(2) + ReLU fused in one kernel
    s1, (hp1, wp1) = im2col_pool_slabs(x, 5)                         # (4, N*144, 25)
    p1 = conv_pool_relu(_pad_last(s1, LANE), pp["conv1_w"], pp["conv1_b"])
    h1 = p1.reshape(n, hp1, wp1, LANE)[..., :5]                      # (N,12,12,5)

    # conv2 (5->10, k=5) + max_pool2d(2) + ReLU fused in one kernel
    s2, (hp2, wp2) = im2col_pool_slabs(h1, 5)                        # (4, N*16, 125)
    p2 = conv_pool_relu(_pad_last(s2, LANE), pp["conv2_w"], pp["conv2_b"])
    h2 = p2.reshape(n, hp2, wp2, LANE)[..., :10]                     # (N,4,4,10)

    # x.view(-1, 160): PyTorch flattens NCHW, i.e. (C, H, W) order
    flat = jnp.transpose(h2, (0, 3, 1, 2)).reshape(n, 160)
    flat = _pad_last(flat, 2 * LANE)                                 # K 160 -> 256

    # fused fc1 + ReLU + (dropout = identity in eval) + fc2 + log_softmax
    return head_fused(flat, pp["fc1_w"], pp["fc1_b"],
                      pp["fc2_w"], pp["fc2_b"], n_classes=10)        # (N, 10)


if __name__ == "__main__":
    key = jax.random.PRNGKey(0)
    pkey, xkey = jax.random.split(key)
    params = prepare_params(init_params(pkey))
    # Fashion-MNIST sized input, small batch.
    x = jax.random.normal(xkey, (2, 1, 28, 28), dtype=jnp.float32)

    fwd = jax.jit(forward)
    out = jax.block_until_ready(fwd(params, x))

    assert out.shape == (2, 10) and out.dtype == jnp.float32
    assert bool(jnp.all(jnp.isfinite(out)))
    # log_softmax rows must exponentiate to ~1.
    assert bool(jnp.all(jnp.abs(jnp.sum(jnp.exp(out), axis=1) - 1.0) < 1e-4))
    print("KERNEL_OK")
</pallas_src>

<mosaic_0001>
module attributes {stable_mosaic.version = 11 : i64} {
  func.func @_conv_pool_relu_kernel(%arg0: i32, %arg1: memref<4x128x128xf32, #tpu.memory_space<vmem>>, %arg2: memref<128x128xf32, #tpu.memory_space<vmem>>, %arg3: memref<1x128xf32, #tpu.memory_space<vmem>>, %arg4: memref<128x128xf32, #tpu.memory_space<vmem>>) attributes {dimension_semantics = [#tpu.dimension_semantics<parallel>], iteration_bounds = array<i64: 3>, scalar_prefetch = 0 : i64, scratch_operands = 0 : i64, tpu.core_type = #tpu.core_type<tc>, window_params = [{transform_indices = @transform_0, window_bounds = array<i64: 4, 128, 128>}, {pipeline_mode = #tpu.pipeline_mode<synchronous>, transform_indices = @transform_1, window_bounds = array<i64: 128, 128>}, {pipeline_mode = #tpu.pipeline_mode<synchronous>, transform_indices = @transform_2, window_bounds = array<i64: 1, 128>}, {transform_indices = @transform_3, window_bounds = array<i64: 128, 128>}]} {
    %c0 = arith.constant 0 : index
    %c0_0 = arith.constant 0 : index
    %0 = vector.load %arg2[%c0, %c0_0] : memref<128x128xf32, #tpu.memory_space<vmem>>, vector<128x128xf32>
    %c0_1 = arith.constant 0 : index
    %c0_2 = arith.constant 0 : index
    %c0_3 = arith.constant 0 : index
    %1 = vector.load %arg1[%c0_1, %c0_2, %c0_3] : memref<4x128x128xf32, #tpu.memory_space<vmem>>, vector<1x128x128xf32>
    %2 = vector.shape_cast %1 : vector<1x128x128xf32> to vector<128x128xf32>
    %cst = arith.constant dense<0.000000e+00> : vector<128x128xf32>
    %3 = tpu.matmul %2, %0, %cst {dimension_numbers = #tpu.dot_dimension_numbers<[1], [0], [0], [1], [0, 0, 1, 1], [], []>} : vector<128x128xf32>, vector<128x128xf32>, vector<128x128xf32> -> vector<128x128xf32>
    %c1 = arith.constant 1 : index
    %c0_4 = arith.constant 0 : index
    %c0_5 = arith.constant 0 : index
    %4 = vector.load %arg1[%c1, %c0_4, %c0_5] : memref<4x128x128xf32, #tpu.memory_space<vmem>>, vector<1x128x128xf32>
    %5 = vector.shape_cast %4 : vector<1x128x128xf32> to vector<128x128xf32>
    %cst_6 = arith.constant dense<0.000000e+00> : vector<128x128xf32>
    %6 = tpu.matmul %5, %0, %cst_6 {dimension_numbers = #tpu.dot_dimension_numbers<[1], [0], [0], [1], [0, 0, 1, 1], [], []>} : vector<128x128xf32>, vector<128x128xf32>, vector<128x128xf32> -> vector<128x128xf32>
    %7 = arith.maximumf %3, %6 : vector<128x128xf32>
    %c2 = arith.constant 2 : index
    %c0_7 = arith.constant 0 : index
    %c0_8 = arith.constant 0 : index
    %8 = vector.load %arg1[%c2, %c0_7, %c0_8] : memref<4x128x128xf32, #tpu.memory_space<vmem>>, vector<1x128x128xf32>
    %9 = vector.shape_cast %8 : vector<1x128x128xf32> to vector<128x128xf32>
    %cst_9 = arith.constant dense<0.000000e+00> : vector<128x128xf32>
    %10 = tpu.matmul %9, %0, %cst_9 {dimension_numbers = #tpu.dot_dimension_numbers<[1], [0], [0], [1], [0, 0, 1, 1], [], []>} : vector<128x128xf32>, vector<128x128xf32>, vector<128x128xf32> -> vector<128x128xf32>
    %11 = arith.maximumf %7, %10 : vector<128x128xf32>
    %c3 = arith.constant 3 : index
    %c0_10 = arith.constant 0 : index
    %c0_11 = arith.constant 0 : index
    %12 = vector.load %arg1[%c3, %c0_10, %c0_11] : memref<4x128x128xf32, #tpu.memory_space<vmem>>, vector<1x128x128xf32>
    %13 = vector.shape_cast %12 : vector<1x128x128xf32> to vector<128x128xf32>
    %cst_12 = arith.constant dense<0.000000e+00> : vector<128x128xf32>
    %14 = tpu.matmul %13, %0, %cst_12 {dimension_numbers = #tpu.dot_dimension_numbers<[1], [0], [0], [1], [0, 0, 1, 1], [], []>} : vector<128x128xf32>, vector<128x128xf32>, vector<128x128xf32> -> vector<128x128xf32>
    %15 = arith.maximumf %11, %14 : vector<128x128xf32>
    %c0_13 = arith.constant 0 : index
    %c0_14 = arith.constant 0 : index
    %16 = vector.load %arg3[%c0_13, %c0_14] : memref<1x128xf32, #tpu.memory_space<vmem>>, vector<1x128xf32>
    %17 = vector.broadcast %16 : vector<1x128xf32> to vector<128x128xf32>
    %18 = arith.addf %15, %17 : vector<128x128xf32>
    %cst_15 = arith.constant 0.000000e+00 : f32
    %19 = vector.broadcast %cst_15 : f32 to vector<128x128xf32>
    %20 = arith.maximumf %18, %19 : vector<128x128xf32>
    %c0_16 = arith.constant 0 : index
    %c0_17 = arith.constant 0 : index
    %21 = vector.load %arg4[%c0_16, %c0_17] : memref<128x128xf32, #tpu.memory_space<vmem>>, vector<128x128xf32>
    tpu.vector_store %arg4[%c0_16, %c0_17], %20 {strides = array<i32>} : memref<128x128xf32, #tpu.memory_space<vmem>>, vector<128x128xf32>,
    return
  }
  func.func @transform_0(%arg0: i32) -> (i32, i32, i32) {
    %c0_i32 = arith.constant 0 : i32
    %c0_i32_0 = arith.constant 0 : i32
    %c0_i32_1 = arith.constant 0 : i32
    return %c0_i32, %arg0, %c0_i32_0 : i32, i32, i32
  }
  func.func @transform_1(%arg0: i32) -> (i32, i32) {
    %c0_i32 = arith.constant 0 : i32
    %c0_i32_0 = arith.constant 0 : i32
    %c0_i32_1 = arith.constant 0 : i32
    return %c0_i32, %c0_i32_0 : i32, i32
  }
  func.func @transform_2(%arg0: i32) -> (i32, i32) {
    %c0_i32 = arith.constant 0 : i32
    %c0_i32_0 = arith.constant 0 : i32
    %c0_i32_1 = arith.constant 0 : i32
    return %c0_i32, %c0_i32_0 : i32, i32
  }
  func.func @transform_3(%arg0: i32) -> (i32, i32) {
    %c0_i32 = arith.constant 0 : i32
    %c0_i32_0 = arith.constant 0 : i32
    return %arg0, %c0_i32 : i32, i32
  }
}

module attributes {stable_mosaic.version = 11 : i64} {
  func.func @_conv_pool_relu_kernel(%arg0: i32, %arg1: memref<4x32x128xf32, #tpu.memory_space<vmem>>, %arg2: memref<128x128xf32, #tpu.memory_space<vmem>>, %arg3: memref<1x128xf32, #tpu.memory_space<vmem>>, %arg4: memref<32x128xf32, #tpu.memory_space<vmem>>) attributes {dimension_semantics = [#tpu.dimension_semantics<parallel>], iteration_bounds = array<i64: 1>, scalar_prefetch = 0 : i64, scratch_operands = 0 : i64, tpu.core_type = #tpu.core_type<tc>, window_params = [{transform_indices = @transform_0, window_bounds = array<i64: 4, 32, 128>}, {pipeline_mode = #tpu.pipeline_mode<synchronous>, transform_indices = @transform_1, window_bounds = array<i64: 128, 128>}, {pipeline_mode = #tpu.pipeline_mode<synchronous>, transform_indices = @transform_2, window_bounds = array<i64: 1, 128>}, {transform_indices = @transform_3, window_bounds = array<i64: 32, 128>}]} {
    %c0 = arith.constant 0 : index
    %c0_0 = arith.constant 0 : index
    %0 = vector.load %arg2[%c0, %c0_0] : memref<128x128xf32, #tpu.memory_space<vmem>>, vector<128x128xf32>
    %c0_1 = arith.constant 0 : index
    %c0_2 = arith.constant 0 : index
    %c0_3 = arith.constant 0 : index
    %1 = vector.load %arg1[%c0_1, %c0_2, %c0_3] : memref<4x32x128xf32, #tpu.memory_space<vmem>>, vector<1x32x128xf32>
    %2 = vector.shape_cast %1 : vector<1x32x128xf32> to vector<32x128xf32>
    %cst = arith.constant dense<0.000000e+00> : vector<32x128xf32>
    %3 = tpu.matmul %2, %0, %cst {dimension_numbers = #tpu.dot_dimension_numbers<[1], [0], [0], [1], [0, 0, 1, 1], [], []>} : vector<32x128xf32>, vector<128x128xf32>, vector<32x128xf32> -> vector<32x128xf32>
    %c1 = arith.constant 1 : index
    %c0_4 = arith.constant 0 : index
    %c0_5 = arith.constant 0 : index
    %4 = vector.load %arg1[%c1, %c0_4, %c0_5] : memref<4x32x128xf32, #tpu.memory_space<vmem>>, vector<1x32x128xf32>
    %5 = vector.shape_cast %4 : vector<1x32x128xf32> to vector<32x128xf32>
    %cst_6 = arith.constant dense<0.000000e+00> : vector<32x128xf32>
    %6 = tpu.matmul %5, %0, %cst_6 {dimension_numbers = #tpu.dot_dimension_numbers<[1], [0], [0], [1], [0, 0, 1, 1], [], []>} : vector<32x128xf32>, vector<128x128xf32>, vector<32x128xf32> -> vector<32x128xf32>
    %7 = arith.maximumf %3, %6 : vector<32x128xf32>
    %c2 = arith.constant 2 : index
    %c0_7 = arith.constant 0 : index
    %c0_8 = arith.constant 0 : index
    %8 = vector.load %arg1[%c2, %c0_7, %c0_8] : memref<4x32x128xf32, #tpu.memory_space<vmem>>, vector<1x32x128xf32>
    %9 = vector.shape_cast %8 : vector<1x32x128xf32> to vector<32x128xf32>
    %cst_9 = arith.constant dense<0.000000e+00> : vector<32x128xf32>
    %10 = tpu.matmul %9, %0, %cst_9 {dimension_numbers = #tpu.dot_dimension_numbers<[1], [0], [0], [1], [0, 0, 1, 1], [], []>} : vector<32x128xf32>, vector<128x128xf32>, vector<32x128xf32> -> vector<32x128xf32>
    %11 = arith.maximumf %7, %10 : vector<32x128xf32>
    %c3 = arith.constant 3 : index
    %c0_10 = arith.constant 0 : index
    %c0_11 = arith.constant 0 : index
    %12 = vector.load %arg1[%c3, %c0_10, %c0_11] : memref<4x32x128xf32, #tpu.memory_space<vmem>>, vector<1x32x128xf32>
    %13 = vector.shape_cast %12 : vector<1x32x128xf32> to vector<32x128xf32>
    %cst_12 = arith.constant dense<0.000000e+00> : vector<32x128xf32>
    %14 = tpu.matmul %13, %0, %cst_12 {dimension_numbers = #tpu.dot_dimension_numbers<[1], [0], [0], [1], [0, 0, 1, 1], [], []>} : vector<32x128xf32>, vector<128x128xf32>, vector<32x128xf32> -> vector<32x128xf32>
    %15 = arith.maximumf %11, %14 : vector<32x128xf32>
    %c0_13 = arith.constant 0 : index
    %c0_14 = arith.constant 0 : index
    %16 = vector.load %arg3[%c0_13, %c0_14] : memref<1x128xf32, #tpu.memory_space<vmem>>, vector<1x128xf32>
    %17 = vector.broadcast %16 : vector<1x128xf32> to vector<32x128xf32>
    %18 = arith.addf %15, %17 : vector<32x128xf32>
    %cst_15 = arith.constant 0.000000e+00 : f32
    %19 = vector.broadcast %cst_15 : f32 to vector<32x128xf32>
    %20 = arith.maximumf %18, %19 : vector<32x128xf32>
    %c0_16 = arith.constant 0 : index
    %c0_17 = arith.constant 0 : index
    %21 = vector.load %arg4[%c0_16, %c0_17] : memref<32x128xf32, #tpu.memory_space<vmem>>, vector<32x128xf32>
    tpu.vector_store %arg4[%c0_16, %c0_17], %20 {strides = array<i32>} : memref<32x128xf32, #tpu.memory_space<vmem>>, vector<32x128xf32>,
    return
  }
  func.func @transform_0(%arg0: i32) -> (i32, i32, i32) {
    %c0_i32 = arith.constant 0 : i32
    %c0_i32_0 = arith.constant 0 : i32
    %c0_i32_1 = arith.constant 0 : i32
    return %c0_i32, %arg0, %c0_i32_0 : i32, i32, i32
  }
  func.func @transform_1(%arg0: i32) -> (i32, i32) {
    %c0_i32 = arith.constant 0 : i32
    %c0_i32_0 = arith.constant 0 : i32
    %c0_i32_1 = arith.constant 0 : i32
    return %c0_i32, %c0_i32_0 : i32, i32
  }
  func.func @transform_2(%arg0: i32) -> (i32, i32) {
    %c0_i32 = arith.constant 0 : i32
    %c0_i32_0 = arith.constant 0 : i32
    %c0_i32_1 = arith.constant 0 : i32
    return %c0_i32, %c0_i32_0 : i32, i32
  }
  func.func @transform_3(%arg0: i32) -> (i32, i32) {
    %c0_i32 = arith.constant 0 : i32
    %c0_i32_0 = arith.constant 0 : i32
    return %arg0, %c0_i32 : i32, i32
  }
}

module attributes {stable_mosaic.version = 11 : i64} {
  func.func @_head_kernel(%arg0: i32, %arg1: memref<8x256xf32, #tpu.memory_space<vmem>>, %arg2: memref<256x128xf32, #tpu.memory_space<vmem>>, %arg3: memref<1x128xf32, #tpu.memory_space<vmem>>, %arg4: memref<128x128xf32, #tpu.memory_space<vmem>>, %arg5: memref<1x128xf32, #tpu.memory_space<vmem>>, %arg6: memref<8x128xf32, #tpu.memory_space<vmem>>) attributes {dimension_semantics = [#tpu.dimension_semantics<parallel>], iteration_bounds = array<i64: 1>, scalar_prefetch = 0 : i64, scratch_operands = 0 : i64, tpu.core_type = #tpu.core_type<tc>, window_params = [{transform_indices = @transform_0, window_bounds = array<i64: 8, 256>}, {pipeline_mode = #tpu.pipeline_mode<synchronous>, transform_indices = @transform_1, window_bounds = array<i64: 256, 128>}, {pipeline_mode = #tpu.pipeline_mode<synchronous>, transform_indices = @transform_2, window_bounds = array<i64: 1, 128>}, {pipeline_mode = #tpu.pipeline_mode<synchronous>, transform_indices = @transform_3, window_bounds = array<i64: 128, 128>}, {pipeline_mode = #tpu.pipeline_mode<synchronous>, transform_indices = @transform_4, window_bounds = array<i64: 1, 128>}, {transform_indices = @transform_5, window_bounds = array<i64: 8, 128>}]} {
    %c0 = arith.constant 0 : index
    %c0_0 = arith.constant 0 : index
    %0 = vector.load %arg1[%c0, %c0_0] : memref<8x256xf32, #tpu.memory_space<vmem>>, vector<8x256xf32>
    %c0_1 = arith.constant 0 : index
    %c0_2 = arith.constant 0 : index
    %1 = vector.load %arg2[%c0_1, %c0_2] : memref<256x128xf32, #tpu.memory_space<vmem>>, vector<256x128xf32>
    %cst = arith.constant dense<0.000000e+00> : vector<8x128xf32>
    %2 = tpu.matmul %0, %1, %cst {dimension_numbers = #tpu.dot_dimension_numbers<[1], [0], [0], [1], [0, 0, 1, 1], [], []>} : vector<8x256xf32>, vector<256x128xf32>, vector<8x128xf32> -> vector<8x128xf32>
    %c0_3 = arith.constant 0 : index
    %c0_4 = arith.constant 0 : index
    %3 = vector.load %arg3[%c0_3, %c0_4] : memref<1x128xf32, #tpu.memory_space<vmem>>, vector<1x128xf32>
    %4 = vector.broadcast %3 : vector<1x128xf32> to vector<8x128xf32>
    %5 = arith.addf %2, %4 : vector<8x128xf32>
    %cst_5 = arith.constant 0.000000e+00 : f32
    %6 = vector.broadcast %cst_5 : f32 to vector<8x128xf32>
    %7 = arith.maximumf %5, %6 : vector<8x128xf32>
    %c0_6 = arith.constant 0 : index
    %c0_7 = arith.constant 0 : index
    %8 = vector.load %arg4[%c0_6, %c0_7] : memref<128x128xf32, #tpu.memory_space<vmem>>, vector<128x128xf32>
    %cst_8 = arith.constant dense<0.000000e+00> : vector<8x128xf32>
    %9 = tpu.matmul %7, %8, %cst_8 {dimension_numbers = #tpu.dot_dimension_numbers<[1], [0], [0], [1], [0, 0, 1, 1], [], []>} : vector<8x128xf32>, vector<128x128xf32>, vector<8x128xf32> -> vector<8x128xf32>
    %c0_9 = arith.constant 0 : index
    %c0_10 = arith.constant 0 : index
    %10 = vector.load %arg5[%c0_9, %c0_10] : memref<1x128xf32, #tpu.memory_space<vmem>>, vector<1x128xf32>
    %11 = vector.broadcast %10 : vector<1x128xf32> to vector<8x128xf32>
    %12 = arith.addf %9, %11 : vector<8x128xf32>
    %13 = tpu.iota {dimensions = array<i32: 1>} : vector<8x128xi32>
    %c10_i32 = arith.constant 10 : i32
    %14 = vector.broadcast %c10_i32 : i32 to vector<8x128xi32>
    %15 = arith.cmpi slt, %13, %14 : vector<8x128xi32>
    %cst_11 = arith.constant -1.000000e+30 : f32
    %16 = vector.broadcast %cst_11 : f32 to vector<8x128xf32>
    %17 = arith.select %15, %12, %16 : vector<8x128xi1>, vector<8x128xf32>
    %cst_12 = arith.constant dense<0xFF800000> : vector<8xf32>
    %18 = vector.multi_reduction <maximumf>, %17, %cst_12 [1] : vector<8x128xf32> to vector<8xf32>
    %19 = vector.shape_cast %18 : vector<8xf32> to vector<8x1xf32>
    %20 = vector.broadcast %19 : vector<8x1xf32> to vector<8x128xf32>
    %21 = arith.subf %17, %20 : vector<8x128xf32>
    %22 = math.exp %21 : vector<8x128xf32>
    %cst_13 = arith.constant dense<0.000000e+00> : vector<8xf32>
    %23 = vector.multi_reduction <add>, %22, %cst_13 [1] : vector<8x128xf32> to vector<8xf32>
    %24 = vector.shape_cast %23 : vector<8xf32> to vector<8x1xf32>
    %25 = math.log %24 : vector<8x1xf32>
    %26 = vector.broadcast %25 : vector<8x1xf32> to vector<8x128xf32>
    %27 = arith.subf %21, %26 : vector<8x128xf32>
    %c0_14 = arith.constant 0 : index
    %c0_15 = arith.constant 0 : index
    %28 = vector.load %arg6[%c0_14, %c0_15] : memref<8x128xf32, #tpu.memory_space<vmem>>, vector<8x128xf32>
    tpu.vector_store %arg6[%c0_14, %c0_15], %27 {strides = array<i32>} : memref<8x128xf32, #tpu.memory_space<vmem>>, vector<8x128xf32>,
    return
  }
  func.func @transform_0(%arg0: i32) -> (i32, i32) {
    %c0_i32 = arith.constant 0 : i32
    %c0_i32_0 = arith.constant 0 : i32
    return %arg0, %c0_i32 : i32, i32
  }
  func.func @transform_1(%arg0: i32) -> (i32, i32) {
    %c0_i32 = arith.constant 0 : i32
    %c0_i32_0 = arith.constant 0 : i32
    %c0_i32_1 = arith.constant 0 : i32
    return %c0_i32, %c0_i32_0 : i32, i32
  }
  func.func @transform_2(%arg0: i32) -> (i32, i32) {
    %c0_i32 = arith.constant 0 : i32
    %c0_i32_0 = arith.constant 0 : i32
    %c0_i32_1 = arith.constant 0 : i32
    return %c0_i32, %c0_i32_0 : i32, i32
  }
  func.func @transform_3(%arg0: i32) -> (i32, i32) {
    %c0_i32 = arith.constant 0 : i32
    %c0_i32_0 = arith.constant 0 : i32
    %c0_i32_1 = arith.constant 0 : i32
    return %c0_i32, %c0_i32_0 : i32, i32
  }
  func.func @transform_4(%arg0: i32) -> (i32, i32) {
    %c0_i32 = arith.constant 0 : i32
    %c0_i32_0 = arith.constant 0 : i32
    %c0_i32_1 = arith.constant 0 : i32
    return %c0_i32, %c0_i32_0 : i32, i32
  }
  func.func @transform_5(%arg0: i32) -> (i32, i32) {
    %c0_i32 = arith.constant 0 : i32
    %c0_i32_0 = arith.constant 0 : i32
    return %arg0, %c0_i32 : i32, i32
  }
}

</mosaic_0001>

<bundles_post_ra>
// kernel: forward.3
= control target key start
LH: loop header
LB: loop body
LE: loop exit
PB: predicated region body
PF: predicated region fallthrough
CT: control target
= control target key end

     0   :  { %s1899_s12 = smov 0   ;;  %s1901_s13 = smov 0   ;;  %s2424_s0 = inlined_call_operand.vmem [shape: f32[4,384,128], index: 0, kind: input, shape index: {}]   ;;  %s2425_s1 = inlined_call_operand.vmem [shape: f32[128,128], index: 1, kind: input, shape index: {}]   ;;  %s2426_s2 = inlined_call_operand.vmem [shape: f32[1,128], index: 2, kind: input, shape index: {}]   ;;  %s2427_s3 = inlined_call_operand.vmem [shape: f32[384,128], index: 3, kind: output, shape index: {}]  }
   0x1   :  { %s1903_s14 = smov 0  }
   0x2 LB: > { %s1288_s15 = sadd.s32 4294967295, %s1877_s14   ;;  %s1916_s16 = sadd.s32 1, %s1877_s14   ;;  %s1877_s14 = sphi %s1903_s14, %s2430_s14   ;;  %s1873_s13 = sphi %s1901_s13, %s2429_s13   ;;  %s1869_s12 = sphi %s1899_s12, %s2428_s12  }
   0x3   : > { %s17_s17 = ssub.s32 %s1877_s14, %s1916_s16  ;;  %s20_s18 = sadd.s32 1, %s1873_s13 }
   0x4   : > { %p18_p0 = scmp.eq.s32.totalorder %s17_s17, 0  ;;  %p27_p1 = scmp.ne.s32.totalorder %s1873_s13, %s1869_s12 }
   0x5   : > { %p28_p2 = scmp.eq.s32.totalorder %s1877_s14, 0  ;;  %p1291_p4 = scmp.ge.s32.totalorder %s1877_s14, 3 }
   0x6   : > { %s1925_s19 = scalar_select %p18_p0, %s1873_s13, %s20_s18  }
   0x7   : > { %p29_p3 = por %p28_p2, %p27_p1  ;;  %127 = sbr.rel (%p1291_p4) target bundleno = 50 (0x32), region = 24 }
   0xe   : > { %130 = sbr.rel (!%p29_p3) target bundleno = 50 (0x32), region = 28  ;;  %s132_s20 = sand.u32 (%p29_p3), 1, %s1873_s13  }
   0xf   : > { %s1350_s21 = sshll.u32 (%p29_p3), %s1877_s14, 7  ;;  %s1292_s22 = sshll.u32 (%p29_p3), %s132_s20, 9 }
  0x10   : > { %s1933_s25 = scalar_lea.vmem (%p29_p3), %s2424_s0, %s1350_s21  ;;  %s1938_s26 = scalar_lea.vmem (%p29_p3), [#allocation2], %s1292_s22 }
  0x11   : > { %v291_v0 = vld [vmem:[%s1933_s25] sm:$0xff] (%p29_p3)  ;;  %v293_v1 = vld [vmem:[%s1933_s25 + $0x8] sm:$0xff] (%p29_p3)  ;;  %v295_v2 = vld [vmem:[%s1933_s25 + $0x10] sm:$0xff] (%p29_p3) }
  0x12   : > { %292 = vst [vmem:[%s1938_s26] sm:$0xff] (%p29_p3), %v291_v0  ;;  %294 = vst [vmem:[%s1938_s26 + $0x8] sm:$0xff] (%p29_p3), %v293_v1  ;;  %v297_v3 = vld [vmem:[%s1933_s25 + $0x18] sm:$0xff] (%p29_p3)  ;;  %v299_v4 = vld [vmem:[%s1933_s25 + $0x20] sm:$0xff] (%p29_p3) }
  0x13   : > { %296 = vst [vmem:[%s1938_s26 + $0x10] sm:$0xff] (%p29_p3), %v295_v2  ;;  %v301_v5 = vld [vmem:[%s1933_s25 + $0x28] sm:$0xff] (%p29_p3)  ;;  %298 = vst [vmem:[%s1938_s26 + $0x18] sm:$0xff] (%p29_p3), %v297_v3  ;;  %v303_v6 = vld [vmem:[%s1933_s25 + $0x30] sm:$0xff] (%p29_p3) }
  0x14   : > { %300 = vst [vmem:[%s1938_s26 + $0x20] sm:$0xff] (%p29_p3), %v299_v4  ;;  %302 = vst [vmem:[%s1938_s26 + $0x28] sm:$0xff] (%p29_p3), %v301_v5  ;;  %v305_v7 = vld [vmem:[%s1933_s25 + $0x38] sm:$0xff] (%p29_p3)  ;;  %v307_v8 = vld [vmem:[%s1933_s25 + $0x40] sm:$0xff] (%p29_p3) }
  0x15   : > { %304 = vst [vmem:[%s1938_s26 + $0x30] sm:$0xff] %v303_v6  ;;  %306 = vst [vmem:[%s1938_s26 + $0x38] sm:$0xff] %v305_v7  ;;  %v309_v9 = vld [vmem:[%s1933_s25 + $0x48] sm:$0xff]  ;;  %v311_v10 = vld [vmem:[%s1933_s25 + $0x50] sm:$0xff] }
  0x16   : > { %308 = vst [vmem:[%s1938_s26 + $0x40] sm:$0xff] %v307_v8  ;;  %v313_v11 = vld [vmem:[%s1933_s25 + $0x58] sm:$0xff]  ;;  %310 = vst [vmem:[%s1938_s26 + $0x48] sm:$0xff] %v309_v9  ;;  %v315_v12 = vld [vmem:[%s1933_s25 + $0x60] sm:$0xff] }
  0x17   : > { %312 = vst [vmem:[%s1938_s26 + $0x50] sm:$0xff] %v311_v10  ;;  %314 = vst [vmem:[%s1938_s26 + $0x58] sm:$0xff] %v313_v11  ;;  %v317_v13 = vld [vmem:[%s1933_s25 + $0x68] sm:$0xff]  ;;  %v319_v14 = vld [vmem:[%s1933_s25 + $0x70] sm:$0xff] }
  0x18   : > { %316 = vst [vmem:[%s1938_s26 + $0x60] sm:$0xff] %v315_v12  ;;  %318 = vst [vmem:[%s1938_s26 + $0x68] sm:$0xff] %v317_v13  ;;  %v321_v15 = vld [vmem:[%s1933_s25 + $0x78] sm:$0xff]  ;;  %v323_v16 = vld [vmem:[%s1933_s25 + $0x180] sm:$0xff] }
  0x19   : > { %320 = vst [vmem:[%s1938_s26 + $0x70] sm:$0xff] %v319_v14  ;;  %v325_v17 = vld [vmem:[%s1933_s25 + $0x188] sm:$0xff]  ;;  %322 = vst [vmem:[%s1938_s26 + $0x78] sm:$0xff] %v321_v15  ;;  %v327_v18 = vld [vmem:[%s1933_s25 + $0x190] sm:$0xff] }
  0x1a   : > { %324 = vst [vmem:[%s1938_s26 + $0x80] sm:$0xff] %v323_v16  ;;  %326 = vst [vmem:[%s1938_s26 + $0x88] sm:$0xff] %v325_v17  ;;  %v329_v19 = vld [vmem:[%s1933_s25 + $0x198] sm:$0xff]  ;;  %v331_v20 = vld [vmem:[%s1933_s25 + $0x1a0] sm:$0xff] }
  0x1b   : > { %328 = vst [vmem:[%s1938_s26 + $0x90] sm:$0xff] %v327_v18  ;;  %330 = vst [vmem:[%s1938_s26 + $0x98] sm:$0xff] %v329_v19  ;;  %v333_v21 = vld [vmem:[%s1933_s25 + $0x1a8] sm:$0xff]  ;;  %v335_v22 = vld [vmem:[%s1933_s25 + $0x1b0] sm:$0xff] }
  0x1c   : > { %332 = vst [vmem:[%s1938_s26 + $0xa0] sm:$0xff] %v331_v20  ;;  %v337_v23 = vld [vmem:[%s1933_s25 + $0x1b8] sm:$0xff]  ;;  %334 = vst [vmem:[%s1938_s26 + $0xa8] sm:$0xff] %v333_v21  ;;  %v339_v24 = vld [vmem:[%s1933_s25 + $0x1c0] sm:$0xff] }
  0x1d   : > { %336 = vst [vmem:[%s1938_s26 + $0xb0] sm:$0xff] %v335_v22  ;;  %338 = vst [vmem:[%s1938_s26 + $0xb8] sm:$0xff] %v337_v23  ;;  %v341_v25 = vld [vmem:[%s1933_s25 + $0x1c8] sm:$0xff]  ;;  %v343_v26 = vld [vmem:[%s1933_s25 + $0x1d0] sm:$0xff] }
  0x1e   : > { %340 = vst [vmem:[%s1938_s26 + $0xc0] sm:$0xff] %v339_v24  ;;  %342 = vst [vmem:[%s1938_s26 + $0xc8] sm:$0xff] %v341_v25  ;;  %v345_v27 = vld [vmem:[%s1933_s25 + $0x1d8] sm:$0xff]  ;;  %v347_v28 = vld [vmem:[%s1933_s25 + $0x1e0] sm:$0xff] }
  0x1f   : > { %344 = vst [vmem:[%s1938_s26 + $0xd0] sm:$0xff] %v343_v26  ;;  %v349_v29 = vld [vmem:[%s1933_s25 + $0x1e8] sm:$0xff]  ;;  %346 = vst [vmem:[%s1938_s26 + $0xd8] sm:$0xff] %v345_v27  ;;  %v351_v30 = vld [vmem:[%s1933_s25 + $0x1f0] sm:$0xff] }
  0x20   : > { %348 = vst [vmem:[%s1938_s26 + $0xe0] sm:$0xff] %v347_v28  ;;  %350 = vst [vmem:[%s1938_s26 + $0xe8] sm:$0xff] %v349_v29  ;;  %v353_v31 = vld [vmem:[%s1933_s25 + $0x1f8] sm:$0xff]  ;;  %v355_v32 = vld [vmem:[%s1933_s25 + $0x300] sm:$0xff] }
  0x21   : > { %352 = vst [vmem:[%s1938_s26 + $0xf0] sm:$0xff] %v351_v30  ;;  %354 = vst [vmem:[%s1938_s26 + $0xf8] sm:$0xff] %v353_v31  ;;  %v357_v33 = vld [vmem:[%s1933_s25 + $0x308] sm:$0xff]  ;;  %v359_v34 = vld [vmem:[%s1933_s25 + $0x310] sm:$0xff] }
  0x22   : > { %356 = vst [vmem:[%s1938_s26 + $0x100] sm:$0xff] %v355_v32  ;;  %v361_v35 = vld [vmem:[%s1933_s25 + $0x318] sm:$0xff]  ;;  %358 = vst [vmem:[%s1938_s26 + $0x108] sm:$0xff] %v357_v33  ;;  %v363_v36 = vld [vmem:[%s1933_s25 + $0x320] sm:$0xff] }
  0x23   : > { %360 = vst [vmem:[%s1938_s26 + $0x110] sm:$0xff] %v359_v34  ;;  %362 = vst [vmem:[%s1938_s26 + $0x118] sm:$0xff] %v361_v35  ;;  %v365_v37 = vld [vmem:[%s1933_s25 + $0x328] sm:$0xff]  ;;  %v367_v38 = vld [vmem:[%s1933_s25 + $0x330] sm:$0xff] }
  0x24   : > { %364 = vst [vmem:[%s1938_s26 + $0x120] sm:$0xff] %v363_v36  ;;  %366 = vst [vmem:[%s1938_s26 + $0x128] sm:$0xff] %v365_v37  ;;  %v369_v39 = vld [vmem:[%s1933_s25 + $0x338] sm:$0xff]  ;;  %v371_v40 = vld [vmem:[%s1933_s25 + $0x340] sm:$0xff] }
  0x25   : > { %368 = vst [vmem:[%s1938_s26 + $0x130] sm:$0xff] %v367_v38  ;;  %v373_v41 = vld [vmem:[%s1933_s25 + $0x348] sm:$0xff]  ;;  %370 = vst [vmem:[%s1938_s26 + $0x138] sm:$0xff] %v369_v39  ;;  %v375_v42 = vld [vmem:[%s1933_s25 + $0x350] sm:$0xff] }
  0x26   : > { %372 = vst [vmem:[%s1938_s26 + $0x140] sm:$0xff] %v371_v40  ;;  %374 = vst [vmem:[%s1938_s26 + $0x148] sm:$0xff] %v373_v41  ;;  %v377_v43 = vld [vmem:[%s1933_s25 + $0x358] sm:$0xff]  ;;  %v379_v44 = vld [vmem:[%s1933_s25 + $0x360] sm:$0xff] }
  0x27   : > { %376 = vst [vmem:[%s1938_s26 + $0x150] sm:$0xff] %v375_v42  ;;  %378 = vst [vmem:[%s1938_s26 + $0x158] sm:$0xff] %v377_v43  ;;  %v381_v45 = vld [vmem:[%s1933_s25 + $0x368] sm:$0xff]  ;;  %v383_v46 = vld [vmem:[%s1933_s25 + $0x370] sm:$0xff] }
  0x28   : > { %380 = vst [vmem:[%s1938_s26 + $0x160] sm:$0xff] %v379_v44  ;;  %v385_v47 = vld [vmem:[%s1933_s25 + $0x378] sm:$0xff]  ;;  %382 = vst [vmem:[%s1938_s26 + $0x168] sm:$0xff] %v381_v45  ;;  %v387_v48 = vld [vmem:[%s1933_s25 + $0x480] sm:$0xff] }
  0x29   : > { %384 = vst [vmem:[%s1938_s26 + $0x170] sm:$0xff] %v383_v46  ;;  %386 = vst [vmem:[%s1938_s26 + $0x178] sm:$0xff] %v385_v47  ;;  %v389_v49 = vld [vmem:[%s1933_s25 + $0x488] sm:$0xff]  ;;  %v391_v50 = vld [vmem:[%s1933_s25 + $0x490] sm:$0xff] }
  0x2a   : > { %388 = vst [vmem:[%s1938_s26 + $0x180] sm:$0xff] %v387_v48  ;;  %390 = vst [vmem:[%s1938_s26 + $0x188] sm:$0xff] %v389_v49  ;;  %v393_v51 = vld [vmem:[%s1933_s25 + $0x498] sm:$0xff]  ;;  %v395_v52 = vld [vmem:[%s1933_s25 + $0x4a0] sm:$0xff] }
  0x2b   : > { %392 = vst [vmem:[%s1938_s26 + $0x190] sm:$0xff] %v391_v50  ;;  %v397_v53 = vld [vmem:[%s1933_s25 + $0x4a8] sm:$0xff]  ;;  %394 = vst [vmem:[%s1938_s26 + $0x198] sm:$0xff] %v393_v51  ;;  %v399_v54 = vld [vmem:[%s1933_s25 + $0x4b0] sm:$0xff] }
  0x2c   : > { %396 = vst [vmem:[%s1938_s26 + $0x1a0] sm:$0xff] %v395_v52  ;;  %398 = vst [vmem:[%s1938_s26 + $0x1a8] sm:$0xff] %v397_v53  ;;  %v401_v55 = vld [vmem:[%s1933_s25 + $0x4b8] sm:$0xff]  ;;  %v403_v56 = vld [vmem:[%s1933_s25 + $0x4c0] sm:$0xff] }
  0x2d   : > { %400 = vst [vmem:[%s1938_s26 + $0x1b0] sm:$0xff] %v399_v54  ;;  %402 = vst [vmem:[%s1938_s26 + $0x1b8] sm:$0xff] %v401_v55  ;;  %v405_v57 = vld [vmem:[%s1933_s25 + $0x4c8] sm:$0xff]  ;;  %v407_v58 = vld [vmem:[%s1933_s25 + $0x4d0] sm:$0xff] }
  0x2e   : > { %404 = vst [vmem:[%s1938_s26 + $0x1c0] sm:$0xff] %v403_v56  ;;  %v409_v59 = vld [vmem:[%s1933_s25 + $0x4d8] sm:$0xff]  ;;  %406 = vst [vmem:[%s1938_s26 + $0x1c8] sm:$0xff] %v405_v57  ;;  %v411_v60 = vld [vmem:[%s1933_s25 + $0x4e0] sm:$0xff] }
  0x2f   : > { %408 = vst [vmem:[%s1938_s26 + $0x1d0] sm:$0xff] %v407_v58  ;;  %410 = vst [vmem:[%s1938_s26 + $0x1d8] sm:$0xff] %v409_v59  ;;  %v413_v61 = vld [vmem:[%s1933_s25 + $0x4e8] sm:$0xff]  ;;  %v415_v62 = vld [vmem:[%s1933_s25 + $0x4f0] sm:$0xff] }
  0x30   : > { %412 = vst [vmem:[%s1938_s26 + $0x1e0] sm:$0xff] %v411_v60  ;;  %414 = vst [vmem:[%s1938_s26 + $0x1e8] sm:$0xff] %v413_v61  ;;  %v417_v63 = vld [vmem:[%s1933_s25 + $0x4f8] sm:$0xff] }
  0x31   : > { %416 = vst [vmem:[%s1938_s26 + $0x1f0] sm:$0xff] %v415_v62  ;;  %418 = vst [vmem:[%s1938_s26 + $0x1f8] sm:$0xff] %v417_v63 }
  0x32 PF: > { %p1295_p5 = scmp.ge.s32.totalorder %s1877_s14, 1  ;;  %p423_p6 = scmp.lt.s32.totalorder %s1877_s14, 4 }
  0x34   : > { %p424_p7 = pnand %p1295_p5, %p423_p6 }
  0x35   : > { %v460_v0 = vld [vmem:[%s2425_s1] sm:$0xff] (!%p424_p7)  ;;  %v461_v1 = vld [vmem:[%s2425_s1 + $0x8] sm:$0xff] (!%p424_p7)  ;;  %v462_v2 = vld [vmem:[%s2425_s1 + $0x10] sm:$0xff] (!%p424_p7)  ;;  %s430_s6 = sand.u32 (!%p424_p7), 1, %s1869_s12   ;;  %s1297_s18 = sshll.u32 (!%p424_p7), %s1288_s15, 4 }
  0x36   : > { %427 = sbr.rel (%p424_p7) target bundleno = 370 (0x172), region = 66  ;;  %v2077_v3 = vpack.c.bf16 (!%p424_p7), %v461_v1, %v460_v0  ;;  %v463_v4 = vld [vmem:[%s2425_s1 + $0x18] sm:$0xff] (!%p424_p7)  ;;  %s1296_s9 = sshll.u32 (!%p424_p7), %s430_s6, 9  ;;  %v464_v6 = vld [vmem:[%s2425_s1 + $0x20] sm:$0xff] (!%p424_p7)  ;;  %v465_v7 = vld [vmem:[%s2425_s1 + $0x28] sm:$0xff] (!%p424_p7) }
  0x37   : > { %v2082_v5 = vpack.c.bf16 (!%p424_p7), %v463_v4, %v462_v2  ;;  %v2096_v8 = vpack.c.bf16 (!%p424_p7), %v465_v7, %v464_v6  ;;  %s2098_s12 = scalar_lea.vmem (!%p424_p7), [#allocation2], %s1296_s9  ;;  %v466_v11 = vld [vmem:[%s2425_s1 + $0x30] sm:$0xff] (!%p424_p7)  ;;  %v467_v12 = vld [vmem:[%s2425_s1 + $0x38] sm:$0xff] (!%p424_p7)  ;;  %v468_v14 = vld [vmem:[%s2425_s1 + $0x40] sm:$0xff] (!%p424_p7)  ;;  %p455_p8 = scmp.lt.s32.totalorder (!%p424_p7), %s1297_s18, 47 }
  0x38   : > { %1704 = vmatprep.subr.bf16.mxu0 (!%p424_p7), %v2077_v3  ;;  %1736 = vmatprep.subr.bf16.mxu1 (!%p424_p7), %v2077_v3  ;;  %v476_v9 = vld [vmem:[%s2098_s12] sm:$0xff] (!%p424_p7)  ;;  %v2112_v13 = vpack.c.bf16 (!%p424_p7), %v467_v12, %v466_v11  ;;  %v469_v15 = vld [vmem:[%s2425_s1 + $0x48] sm:$0xff] (!%p424_p7)  ;;  %v470_v17 = vld [vmem:[%s2425_s1 + $0x50] sm:$0xff] (!%p424_p7) }
  0x39   : > { %1706 = vmatpush3.bf16.msra.mxu0 (!%p424_p7), %v2077_v3  ;;  %1738 = vmatpush3.bf16.msra.mxu1 (!%p424_p7), %v2077_v3  ;;  %v1299_v10 = vld [vmem:[%s2098_s12 + $0x80] sm:$0xff] (!%p424_p7)  ;;  %v2124_v16 = vpack.c.bf16 (!%p424_p7), %v469_v15, %v468_v14  ;;  %v471_v18 = vld [vmem:[%s2425_s1 + $0x58] sm:$0xff] (!%p424_p7)  ;;  %v473_v21 = vld [vmem:[%s2425_s1 + $0x68] sm:$0xff] (!%p424_p7) }
  0x3a   : > { %1708 = vmatprep.subr.bf16.mxu0 (!%p424_p7), %v2082_v5  ;;  %1740 = vmatprep.subr.bf16.mxu1 (!%p424_p7), %v2082_v5  ;;  %v2136_v19 = vpack.c.bf16 (!%p424_p7), %v471_v18, %v470_v17  ;;  %v472_v20 = vld [vmem:[%s2425_s1 + $0x60] sm:$0xff] (!%p424_p7)  ;;  %v474_v23 = vld [vmem:[%s2425_s1 + $0x70] sm:$0xff] (!%p424_p7)  ;;  %v475_v24 = vld [vmem:[%s2425_s1 + $0x78] sm:$0xff] (!%p424_p7) }
  0x3b   : > { %1511 = vmatprep.mubr.f32.mxu0 (!%p424_p7), %v476_v9  ;;  %1567 = vmatprep.mubr.f32.mxu1 (!%p424_p7), %v1299_v10  ;;  %v2148_v22 = vpack.c.bf16 (!%p424_p7), %v473_v21, %v472_v20  ;;  %v2160_v25 = vpack.c.bf16 (!%p424_p7), %v475_v24, %v474_v23  ;;  %v477_v26 = vld [vmem:[%s2098_s12 + $0x8] sm:$0xff] (!%p424_p7)  ;;  %v478_v28 = vld [vmem:[%s2098_s12 + $0x10] sm:$0xff] (!%p424_p7)  ;;  %v479_v30 = vld [vmem:[%s2098_s12 + $0x18] sm:$0xff] (!%p424_p7) }
  0x3c   : > { %v1300_v27 = vld [vmem:[%s2098_s12 + $0x88] sm:$0xff] (!%p424_p7)  ;;  %v1301_v29 = vld [vmem:[%s2098_s12 + $0x90] sm:$0xff] (!%p424_p7)  ;;  %v1302_v31 = vld [vmem:[%s2098_s12 + $0x98] sm:$0xff] (!%p424_p7) }
  0x3d   : > { %1710 = vmatpush3.bf16.msra.mxu0 %v2082_v5  ;;  %1742 = vmatpush3.bf16.msra.mxu1 %v2082_v5  ;;  %v480_v32 = vld [vmem:[%s2098_s12 + $0x20] sm:$0xff]  ;;  %v481_v34 = vld [vmem:[%s2098_s12 + $0x28] sm:$0xff]  ;;  %v482_v36 = vld [vmem:[%s2098_s12 + $0x30] sm:$0xff]  ;;  %s2432_s18 = smov (!%p455_p8, %s1297_s18), 47 }
  0x3e   : > { %1712 = vmatprep.subr.bf16.mxu0 %v2096_v8  ;;  %1744 = vmatprep.subr.bf16.mxu1 %v2096_v8  ;;  %v1303_v33 = vld [vmem:[%s2098_s12 + $0xa0] sm:$0xff]  ;;  %v1304_v35 = vld [vmem:[%s2098_s12 + $0xa8] sm:$0xff]  ;;  %v1305_v37 = vld [vmem:[%s2098_s12 + $0xb0] sm:$0xff] }
  0x3f   : > { %v483_v38 = vld [vmem:[%s2098_s12 + $0x38] sm:$0xff]  ;;  %v484_v40 = vld [vmem:[%s2098_s12 + $0x40] sm:$0xff]  ;;  %v485_v42 = vld [vmem:[%s2098_s12 + $0x48] sm:$0xff] }
  0x40   : > { %v1306_v39 = vld [vmem:[%s2098_s12 + $0xb8] sm:$0xff]  ;;  %v1307_v41 = vld [vmem:[%s2098_s12 + $0xc0] sm:$0xff]  ;;  %v1308_v43 = vld [vmem:[%s2098_s12 + $0xc8] sm:$0xff] }
  0x41   : > { %1714 = vmatpush3.bf16.msra.mxu0 %v2096_v8  ;;  %1746 = vmatpush3.bf16.msra.mxu1 %v2096_v8  ;;  %v486_v44 = vld [vmem:[%s2098_s12 + $0x50] sm:$0xff]  ;;  %v487_v46 = vld [vmem:[%s2098_s12 + $0x58] sm:$0xff]  ;;  %v488_v48 = vld [vmem:[%s2098_s12 + $0x60] sm:$0xff] }
  0x42   : > { %1716 = vmatprep.subr.bf16.mxu0 %v2112_v13  ;;  %1748 = vmatprep.subr.bf16.mxu1 %v2112_v13  ;;  %v1309_v45 = vld [vmem:[%s2098_s12 + $0xd0] sm:$0xff]  ;;  %v1310_v47 = vld [vmem:[%s2098_s12 + $0xd8] sm:$0xff]  ;;  %v1311_v49 = vld [vmem:[%s2098_s12 + $0xe0] sm:$0xff] }
  0x43   : > { %v489_v50 = vld [vmem:[%s2098_s12 + $0x68] sm:$0xff]  ;;  %v490_v52 = vld [vmem:[%s2098_s12 + $0x70] sm:$0xff]  ;;  %v491_v54 = vld [vmem:[%s2098_s12 + $0x78] sm:$0xff] }
  0x44   : > { %v1312_v51 = vld [vmem:[%s2098_s12 + $0xe8] sm:$0xff]  ;;  %v1313_v53 = vld [vmem:[%s2098_s12 + $0xf0] sm:$0xff]  ;;  %v1314_v55 = vld [vmem:[%s2098_s12 + $0xf8] sm:$0xff] }
  0x45   : > { %1718 = vmatpush3.bf16.msra.mxu0 %v2112_v13  ;;  %1750 = vmatpush3.bf16.msra.mxu1 %v2112_v13  ;;  %v1315_v56 = vld [vmem:[%s2098_s12 + $0x100] sm:$0xff]  ;;  %v1316_v58 = vld [vmem:[%s2098_s12 + $0x108] sm:$0xff]  ;;  %v1317_v60 = vld [vmem:[%s2098_s12 + $0x110] sm:$0xff] }
  0x46   : > { %1720 = vmatprep.subr.bf16.mxu0 %v2124_v16  ;;  %1752 = vmatprep.subr.bf16.mxu1 %v2124_v16  ;;  %v1331_v57 = vld [vmem:[%s2098_s12 + $0x180] sm:$0xff]  ;;  %v1332_v59 = vld [vmem:[%s2098_s12 + $0x188] sm:$0xff]  ;;  %v1333_v61 = vld [vmem:[%s2098_s12 + $0x190] sm:$0xff] }
  0x47   : > { %v1318_v62 = vld [vmem:[%s2098_s12 + $0x118] sm:$0xff]  ;;  %v1319_v0 = vld [vmem:[%s2098_s12 + $0x120] sm:$0xff]  ;;  %v1320_v2 = vld [vmem:[%s2098_s12 + $0x128] sm:$0xff] }
  0x48   : > { %v1334_v63 = vld [vmem:[%s2098_s12 + $0x198] sm:$0xff]  ;;  %v1335_v1 = vld [vmem:[%s2098_s12 + $0x1a0] sm:$0xff]  ;;  %v1321_v4 = vld [vmem:[%s2098_s12 + $0x130] sm:$0xff] }
  0x49   : > { %1722 = vmatpush3.bf16.msra.mxu0 %v2124_v16  ;;  %1754 = vmatpush3.bf16.msra.mxu1 %v2124_v16  ;;  %v1322_v6 = vld [vmem:[%s2098_s12 + $0x138] sm:$0xff]  ;;  %v1339_v9 = vld [vmem:[%s2098_s12 + $0x1c0] sm:$0xff]  ;;  %v1324_v10 = vld [vmem:[%s2098_s12 + $0x148] sm:$0xff] }
  0x4a   : > { %1724 = vmatprep.subr.bf16.mxu0 %v2136_v19  ;;  %1756 = vmatprep.subr.bf16.mxu1 %v2136_v19  ;;  %v1338_v7 = vld [vmem:[%s2098_s12 + $0x1b8] sm:$0xff]  ;;  %v1340_v11 = vld [vmem:[%s2098_s12 + $0x1c8] sm:$0xff]  ;;  %v1325_v12 = vld [vmem:[%s2098_s12 + $0x150] sm:$0xff] }
  0x4b   : > { %v1326_v14 = vld [vmem:[%s2098_s12 + $0x158] sm:$0xff]  ;;  %v1343_v17 = vld [vmem:[%s2098_s12 + $0x1e0] sm:$0xff]  ;;  %v1328_v18 = vld [vmem:[%s2098_s12 + $0x168] sm:$0xff] }
  0x4c   : > { %v1342_v15 = vld [vmem:[%s2098_s12 + $0x1d8] sm:$0xff]  ;;  %v1329_v20 = vld [vmem:[%s2098_s12 + $0x170] sm:$0xff] }
  0x4d   : > { %1726 = vmatpush3.bf16.msra.mxu0 %v2136_v19  ;;  %1758 = vmatpush3.bf16.msra.mxu1 %v2136_v19  ;;  %v1345_v21 = vld [vmem:[%s2098_s12 + $0x1f0] sm:$0xff]  ;;  %v1346_v23 = vld [vmem:[%s2098_s12 + $0x1f8] sm:$0xff] }
  0x4e   : > { %1728 = vmatprep.subr.bf16.mxu0 %v2148_v22  ;;  %1760 = vmatprep.subr.bf16.mxu1 %v2148_v22 }
  0x51   : > { %1730 = vmatpush3.bf16.msra.mxu0 %v2148_v22  ;;  %1762 = vmatpush3.bf16.msra.mxu1 %v2148_v22 }
  0x52   : > { %1732 = vmatprep.subr.bf16.mxu0 %v2160_v25  ;;  %1764 = vmatprep.subr.bf16.mxu1 %v2160_v25 }
  0x55   : > { %1734 = vmatpush3.bf16.msra.mxu0 %v2160_v25  ;;  %1766 = vmatpush3.bf16.msra.mxu1 %v2160_v25 }
  0x56   : > { %1768 = vmatprep.subr.bf16.mxu0 %v2077_v3  ;;  %1800 = vmatprep.subr.bf16.mxu1 %v2077_v3 }
  0x58   : > { %1512 = vmatmul.mubr.f32.vlgmr.msra.gmra.mrb[0].mxu0 %v477_v26  ;;  %1568 = vmatmul.mubr.f32.vlgmr.msra.gmra.mrb[0].mxu1 %v1300_v27 }
  0x59   : > { %1770 = vmatpush3.bf16.msra.mxu0 %v2077_v3  ;;  %1514 = vmatprep.mubr.f32.mxu0 %v478_v28 }
  0x5a   : > { %1570 = vmatprep.mubr.f32.mxu1 %v1301_v29  ;;  %1802 = vmatpush3.bf16.msra.mxu1 %v2077_v3  ;;  %v1336_v3 = vld [vmem:[%s2098_s12 + $0x1a8] sm:$0xff] }
  0x5b   : > { %1772 = vmatprep.subr.bf16.mxu0 %v2082_v5  ;;  %1804 = vmatprep.subr.bf16.mxu1 %v2082_v5 }
  0x5c   : > { %1515 = vmatmul.mubr.f32.gmra.mrb[2].mxu0 %v479_v30  ;;  %1571 = vmatmul.mubr.f32.gmra.mrb[2].mxu1 %v1302_v31 }
  0x5d   : > { %1774 = vmatpush3.bf16.msra.mxu0 %v2082_v5  ;;  %1517 = vmatprep.mubr.f32.mxu0 %v480_v32 }
  0x5e   : > { %1573 = vmatprep.mubr.f32.mxu1 %v1303_v33  ;;  %1806 = vmatpush3.bf16.msra.mxu1 %v2082_v5  ;;  %v1337_v5 = vld [vmem:[%s2098_s12 + $0x1b0] sm:$0xff] }
  0x5f   : > { %1776 = vmatprep.subr.bf16.mxu0 %v2096_v8  ;;  %1808 = vmatprep.subr.bf16.mxu1 %v2096_v8 }
  0x60   : > { %1518 = vmatmul.mubr.f32.gmra.mrb[4].mxu0 %v481_v34  ;;  %1574 = vmatmul.mubr.f32.gmra.mrb[4].mxu1 %v1304_v35 }
  0x61   : > { %1778 = vmatpush3.bf16.msra.mxu0 %v2096_v8  ;;  %1520 = vmatprep.mubr.f32.mxu0 %v482_v36 }
  0x62   : > { %1576 = vmatprep.mubr.f32.mxu1 %v1305_v37  ;;  %1810 = vmatpush3.bf16.msra.mxu1 %v2096_v8  ;;  %v1323_v8 = vld [vmem:[%s2098_s12 + $0x140] sm:$0xff] }
  0x63   : > { %1780 = vmatprep.subr.bf16.mxu0 %v2112_v13  ;;  %1812 = vmatprep.subr.bf16.mxu1 %v2112_v13 }
  0x64   : > { %1521 = vmatmul.mubr.f32.gmra.mrb[6].mxu0 %v483_v38  ;;  %1577 = vmatmul.mubr.f32.gmra.mrb[6].mxu1 %v1306_v39 }
  0x65   : > { %1782 = vmatpush3.bf16.msra.mxu0 %v2112_v13  ;;  %1523 = vmatprep.mubr.f32.mxu0 %v484_v40 }
  0x66   : > { %1579 = vmatprep.mubr.f32.mxu1 %v1307_v41  ;;  %1814 = vmatpush3.bf16.msra.mxu1 %v2112_v13  ;;  %v1341_v13 = vld [vmem:[%s2098_s12 + $0x1d0] sm:$0xff] }
  0x67   : > { %1784 = vmatprep.subr.bf16.mxu0 %v2124_v16  ;;  %1816 = vmatprep.subr.bf16.mxu1 %v2124_v16 }
  0x68   : > { %1524 = vmatmul.mubr.f32.gmra.mrb[8].mxu0 %v485_v42  ;;  %1580 = vmatmul.mubr.f32.gmra.mrb[8].mxu1 %v1308_v43 }
  0x69   : > { %1786 = vmatpush3.bf16.msra.mxu0 %v2124_v16  ;;  %1526 = vmatprep.mubr.f32.mxu0 %v486_v44 }
  0x6a   : > { %1582 = vmatprep.mubr.f32.mxu1 %v1309_v45  ;;  %1818 = vmatpush3.bf16.msra.mxu1 %v2124_v16  ;;  %v1327_v16 = vld [vmem:[%s2098_s12 + $0x160] sm:$0xff] }
  0x6b   : > { %1788 = vmatprep.subr.bf16.mxu0 %v2136_v19  ;;  %1820 = vmatprep.subr.bf16.mxu1 %v2136_v19 }
  0x6c   : > { %1527 = vmatmul.mubr.f32.gmra.mrb[10].mxu0 %v487_v46  ;;  %1583 = vmatmul.mubr.f32.gmra.mrb[10].mxu1 %v1310_v47 }
  0x6d   : > { %1790 = vmatpush3.bf16.msra.mxu0 %v2136_v19  ;;  %1529 = vmatprep.mubr.f32.mxu0 %v488_v48 }
  0x6e   : > { %1585 = vmatprep.mubr.f32.mxu1 %v1311_v49  ;;  %1822 = vmatpush3.bf16.msra.mxu1 %v2136_v19  ;;  %v1344_v19 = vld [vmem:[%s2098_s12 + $0x1e8] sm:$0xff] }
  0x6f   : > { %1792 = vmatprep.subr.bf16.mxu0 %v2148_v22  ;;  %1824 = vmatprep.subr.bf16.mxu1 %v2148_v22 }
  0x70   : > { %1530 = vmatmul.mubr.f32.gmra.mrb[12].mxu0 %v489_v50  ;;  %1586 = vmatmul.mubr.f32.gmra.mrb[12].mxu1 %v1312_v51 }
  0x71   : > { %1794 = vmatpush3.bf16.msra.mxu0 %v2148_v22  ;;  %1532 = vmatprep.mubr.f32.mxu0 %v490_v52 }
  0x72   : > { %1588 = vmatprep.mubr.f32.mxu1 %v1313_v53  ;;  %1826 = vmatpush3.bf16.msra.mxu1 %v2148_v22  ;;  %v1330_v22 = vld [vmem:[%s2098_s12 + $0x178] sm:$0xff]  ;;  %s1298_s12 = sshll.u32 %s2432_s18, 3 }
  0x73   : > { %1796 = vmatprep.subr.bf16.mxu0 %v2160_v25  ;;  %1828 = vmatprep.subr.bf16.mxu1 %v2160_v25  ;;  %s2345_s22 = scalar_lea.vmem %s2427_s3, %s1298_s12 }
  0x74   : > { %1533 = vmatmul.mubr.f32.gmra.mrb[14].mxu0 %v491_v54  ;;  %1589 = vmatmul.mubr.f32.gmra.mrb[14].mxu1 %v1314_v55 }
  0x75   : > { %1798 = vmatpush3.bf16.msra.mxu0 %v2160_v25  ;;  %1623 = vmatprep.mubr.f32.mxu0 %v1315_v56 }
  0x76   : > { %1830 = vmatpush3.bf16.msra.mxu1 %v2160_v25  ;;  %1679 = vmatprep.mubr.f32.mxu1 %v1331_v57 }
  0x78   : > { %1624 = vmatmul.mubr.f32.vlgmr.msra.gmra.mrb[16].mxu0 %v1316_v58 }
  0x79   : > { %1680 = vmatmul.mubr.f32.vlgmr.msra.gmra.mrb[16].mxu1 %v1332_v59  ;;  %1626 = vmatprep.mubr.f32.mxu0 %v1317_v60 }
  0x7a   : > { %1682 = vmatprep.mubr.f32.mxu1 %v1333_v61 }
  0x7c   : > { %1627 = vmatmul.mubr.f32.gmra.mrb[18].mxu0 %v1318_v62 }
  0x7d   : > { %1683 = vmatmul.mubr.f32.gmra.mrb[18].mxu1 %v1334_v63  ;;  %1629 = vmatprep.mubr.f32.mxu0 %v1319_v0 }
  0x7e   : > { %1685 = vmatprep.mubr.f32.mxu1 %v1335_v1 }
  0x80   : > { %1630 = vmatmul.mubr.f32.gmra.mrb[20].mxu0 %v1320_v2 }
  0x81   : > { %1686 = vmatmul.mubr.f32.gmra.mrb[20].mxu1 %v1336_v3  ;;  %1632 = vmatprep.mubr.f32.mxu0 %v1321_v4 }
  0x82   : > { %1688 = vmatprep.mubr.f32.mxu1 %v1337_v5 }
  0x84   : > { %1633 = vmatmul.mubr.f32.gmra.mrb[22].mxu0 %v1322_v6 }
  0x85   : > { %1689 = vmatmul.mubr.f32.gmra.mrb[22].mxu1 %v1338_v7  ;;  %1635 = vmatprep.mubr.f32.mxu0 %v1323_v8 }
  0x86   : > { %1691 = vmatprep.mubr.f32.mxu1 %v1339_v9 }
  0x88   : > { %1636 = vmatmul.mubr.f32.gmra.mrb[24].mxu0 %v1324_v10 }
  0x89   : > { %1692 = vmatmul.mubr.f32.gmra.mrb[24].mxu1 %v1340_v11  ;;  %1638 = vmatprep.mubr.f32.mxu0 %v1325_v12 }
  0x8a   : > { %1694 = vmatprep.mubr.f32.mxu1 %v1341_v13  ;;  %v2339_v13 = vld [vmem:[%s2426_s2] ss:$0 sm:$0xff] }
  0x8c   : > { %1639 = vmatmul.mubr.f32.gmra.mrb[26].mxu0 %v1326_v14 }
  0x8d   : > { %1695 = vmatmul.mubr.f32.gmra.mrb[26].mxu1 %v1342_v15  ;;  %1641 = vmatprep.mubr.f32.mxu0 %v1327_v16 }
  0x8e   : > { %1697 = vmatprep.mubr.f32.mxu1 %v1343_v17 }
  0x90   : > { %1642 = vmatmul.mubr.f32.gmra.mrb[28].mxu0 %v1328_v18 }
  0x91   : > { %1698 = vmatmul.mubr.f32.gmra.mrb[28].mxu1 %v1344_v19  ;;  %1644 = vmatprep.mubr.f32.mxu0 %v1329_v20 }
  0x92   : > { %1700 = vmatprep.mubr.f32.mxu1 %v1345_v21 }
  0x94   : > { %1645 = vmatmul.mubr.f32.gmra.mrb[30].mxu0 %v1330_v22 }
  0x95   : > { %1701 = vmatmul.mubr.f32.gmra.mrb[30].mxu1 %v1346_v23 }
 0x12b   : > { %v1513_v24 = vpop.f32.mrb[0].mxu0  ;;  %v1569_v25 = vpop.f32.mrb[0].mxu1 }
 0x12c   : > { %v800_v26 = vmax.f32 %v1513_v24, %v1569_v25  ;;  %v558_v27 = vpop.f32.mrb[1].mxu0  ;;  %v720_v28 = vpop.f32.mrb[1].mxu1 }
 0x12d   : > { %v799_v29 = vmax.f32 %v558_v27, %v720_v28 }
 0x12f   : > { %v1516_v30 = vpop.f32.mrb[2].mxu0  ;;  %v1572_v31 = vpop.f32.mrb[2].mxu1 }
 0x130   : > { %v802_v32 = vmax.f32 %v1516_v30, %v1572_v31  ;;  %v568_v33 = vpop.f32.mrb[3].mxu0  ;;  %v730_v34 = vpop.f32.mrb[3].mxu1 }
 0x131   : > { %v801_v35 = vmax.f32 %v568_v33, %v730_v34 }
 0x133   : > { %v2262_v36 = vpop.f32.mrb[4].mxu0  ;;  %v2264_v37 = vpop.f32.mrb[4].mxu1 }
 0x134   : > { %v804_v38 = vmax.f32 %v2262_v36, %v2264_v37  ;;  %v2268_v39 = vpop.f32.mrb[5].mxu0  ;;  %v2270_v40 = vpop.f32.mrb[5].mxu1 }
 0x135   : > { %v803_v41 = vmax.f32 %v2268_v39, %v2270_v40 }
 0x137   : > { %v2274_v42 = vpop.f32.mrb[6].mxu0  ;;  %v2276_v43 = vpop.f32.mrb[6].mxu1 }
 0x138   : > { %v806_v44 = vmax.f32 %v2274_v42, %v2276_v43  ;;  %v2280_v45 = vpop.f32.mrb[7].mxu0  ;;  %v2282_v46 = vpop.f32.mrb[7].mxu1 }
 0x139   : > { %v805_v47 = vmax.f32 %v2280_v45, %v2282_v46 }
 0x13b   : > { %v2286_v48 = vpop.f32.mrb[8].mxu0  ;;  %v2288_v49 = vpop.f32.mrb[8].mxu1 }
 0x13c   : > { %v808_v50 = vmax.f32 %v2286_v48, %v2288_v49  ;;  %v2292_v51 = vpop.f32.mrb[9].mxu0  ;;  %v2294_v52 = vpop.f32.mrb[9].mxu1 }
 0x13d   : > { %v807_v53 = vmax.f32 %v2292_v51, %v2294_v52 }
 0x13f   : > { %v2298_v54 = vpop.f32.mrb[10].mxu0  ;;  %v2300_v55 = vpop.f32.mrb[10].mxu1 }
 0x140   : > { %v810_v56 = vmax.f32 %v2298_v54, %v2300_v55  ;;  %v2304_v57 = vpop.f32.mrb[11].mxu0  ;;  %v2306_v58 = vpop.f32.mrb[11].mxu1 }
 0x141   : > { %v809_v59 = vmax.f32 %v2304_v57, %v2306_v58 }
 0x143   : > { %v2310_v60 = vpop.f32.mrb[12].mxu0  ;;  %v2312_v61 = vpop.f32.mrb[12].mxu1 }
 0x144   : > { %v812_v62 = vmax.f32 %v2310_v60, %v2312_v61  ;;  %v2318_v63 = vpop.f32.mrb[13].mxu0  ;;  %v2320_v0 = vpop.f32.mrb[13].mxu1 }
 0x145   : > { %v811_v1 = vmax.f32 %v2318_v63, %v2320_v0 }
 0x147   : > { %v2324_v2 = vpop.f32.mrb[14].mxu0  ;;  %v2326_v3 = vpop.f32.mrb[14].mxu1 }
 0x148   : > { %v814_v4 = vmax.f32 %v2324_v2, %v2326_v3  ;;  %v2330_v5 = vpop.f32.mrb[15].mxu0  ;;  %v2332_v6 = vpop.f32.mrb[15].mxu1 }
 0x149   : > { %v813_v7 = vmax.f32 %v2330_v5, %v2332_v6 }
 0x14b   : > { %v1625_v8 = vpop.f32.mrb[16].mxu0 }
 0x14c   : > { %v978_v9 = vmax.f32 %v800_v26, %v1625_v8  ;;  %v898_v10 = vpop.f32.mrb[17].mxu0  ;;  %v1681_v11 = vpop.f32.mrb[16].mxu1 }
 0x14d   : > { %v977_v12 = vmax.f32 %v799_v29, %v898_v10  ;;  %v1076_v14 = vpop.f32.mrb[17].mxu1 }
 0x14e   : > { %v1156_v15 = vmax.f32 %v978_v9, %v1681_v11 }
 0x14f   : > { %v1155_v16 = vmax.f32 %v977_v12, %v1076_v14  ;;  %v1628_v17 = vpop.f32.mrb[18].mxu0 }
 0x150   : > { %v1179_v18 = vadd.f32 %v2339_v13, %v1156_v15  ;;  %v980_v19 = vmax.f32 %v802_v32, %v1628_v17  ;;  %v908_v20 = vpop.f32.mrb[19].mxu0  ;;  %v1684_v21 = vpop.f32.mrb[18].mxu1 }
 0x151   : > { %v1178_v22 = vadd.f32 %v2339_v13, %v1155_v16  ;;  %v979_v23 = vmax.f32 %v801_v35, %v908_v20  ;;  %v1086_v24 = vpop.f32.mrb[19].mxu1 }
 0x152   : > { %v1195_v25 = vmax.f32 %v1179_v18, 0.0  ;;  %v1158_v26 = vmax.f32 %v980_v19, %v1684_v21 }
 0x153   : > { %v1194_v27 = vmax.f32 %v1178_v22, 0.0  ;;  %v1157_v28 = vmax.f32 %v979_v23, %v1086_v24  ;;  %v1631_v29 = vpop.f32.mrb[20].mxu0 }
 0x154   : > { %1211 = vst [vmem:[%s2345_s22 + $0x8] sm:$0xff] %v1195_v25  ;;  %v1181_v30 = vadd.f32 %v2339_v13, %v1158_v26  ;;  %v982_v31 = vmax.f32 %v804_v38, %v1631_v29  ;;  %v918_v32 = vpop.f32.mrb[21].mxu0  ;;  %v1687_v33 = vpop.f32.mrb[20].mxu1 }
 0x155   : > { %1210 = vst [vmem:[%s2345_s22] sm:$0xff] %v1194_v27  ;;  %v1180_v34 = vadd.f32 %v2339_v13, %v1157_v28  ;;  %v981_v35 = vmax.f32 %v803_v41, %v918_v32  ;;  %v1096_v8 = vpop.f32.mrb[21].mxu1 }
 0x156   : > { %v1197_v9 = vmax.f32 %v1181_v30, 0.0  ;;  %v1160_v10 = vmax.f32 %v982_v31, %v1687_v33 }
 0x157   : > { %v1196_v11 = vmax.f32 %v1180_v34, 0.0  ;;  %v1159_v12 = vmax.f32 %v981_v35, %v1096_v8  ;;  %v1634_v14 = vpop.f32.mrb[22].mxu0 }
 0x158   : > { %1213 = vst [vmem:[%s2345_s22 + $0x18] sm:$0xff] %v1197_v9  ;;  %v1183_v36 = vadd.f32 %v2339_v13, %v1160_v10  ;;  %v984_v37 = vmax.f32 %v806_v44, %v1634_v14  ;;  %v928_v38 = vpop.f32.mrb[23].mxu0  ;;  %v1690_v15 = vpop.f32.mrb[22].mxu1 }
 0x159   : > { %1212 = vst [vmem:[%s2345_s22 + $0x10] sm:$0xff] %v1196_v11  ;;  %v1182_v39 = vadd.f32 %v2339_v13, %v1159_v12  ;;  %v983_v40 = vmax.f32 %v805_v47, %v928_v38  ;;  %v1106_v41 = vpop.f32.mrb[23].mxu1 }
 0x15a   : > { %v1199_v16 = vmax.f32 %v1183_v36, 0.0  ;;  %v1162_v17 = vmax.f32 %v984_v37, %v1690_v15 }
 0x15b   : > { %v1198_v18 = vmax.f32 %v1182_v39, 0.0  ;;  %v1161_v19 = vmax.f32 %v983_v40, %v1106_v41  ;;  %v1637_v20 = vpop.f32.mrb[24].mxu0 }
 0x15c   : > { %1215 = vst [vmem:[%s2345_s22 + $0x28] sm:$0xff] %v1199_v16  ;;  %v1185_v42 = vadd.f32 %v2339_v13, %v1162_v17  ;;  %v986_v43 = vmax.f32 %v808_v50, %v1637_v20  ;;  %v938_v44 = vpop.f32.mrb[25].mxu0  ;;  %v1693_v21 = vpop.f32.mrb[24].mxu1 }
 0x15d   : > { %1214 = vst [vmem:[%s2345_s22 + $0x20] sm:$0xff] %v1198_v18  ;;  %v1184_v45 = vadd.f32 %v2339_v13, %v1161_v19  ;;  %v985_v46 = vmax.f32 %v807_v53, %v938_v44  ;;  %v1116_v47 = vpop.f32.mrb[25].mxu1 }
 0x15e   : > { %v1201_v22 = vmax.f32 %v1185_v42, 0.0  ;;  %v1164_v23 = vmax.f32 %v986_v43, %v1693_v21 }
 0x15f   : > { %v1200_v24 = vmax.f32 %v1184_v45, 0.0  ;;  %v1163_v25 = vmax.f32 %v985_v46, %v1116_v47  ;;  %v1640_v26 = vpop.f32.mrb[26].mxu0 }
 0x160   : > { %1217 = vst [vmem:[%s2345_s22 + $0x38] sm:$0xff] %v1201_v22  ;;  %v1187_v48 = vadd.f32 %v2339_v13, %v1164_v23  ;;  %v988_v49 = vmax.f32 %v810_v56, %v1640_v26  ;;  %v948_v50 = vpop.f32.mrb[27].mxu0  ;;  %v1696_v27 = vpop.f32.mrb[26].mxu1 }
 0x161   : > { %1216 = vst [vmem:[%s2345_s22 + $0x30] sm:$0xff] %v1200_v24  ;;  %v1186_v51 = vadd.f32 %v2339_v13, %v1163_v25  ;;  %v987_v52 = vmax.f32 %v809_v59, %v948_v50  ;;  %v1126_v53 = vpop.f32.mrb[27].mxu1 }
 0x162   : > { %v1203_v28 = vmax.f32 %v1187_v48, 0.0  ;;  %v1166_v29 = vmax.f32 %v988_v49, %v1696_v27 }
 0x163   : > { %v1202_v30 = vmax.f32 %v1186_v51, 0.0  ;;  %v1165_v31 = vmax.f32 %v987_v52, %v1126_v53  ;;  %v1643_v32 = vpop.f32.mrb[28].mxu0 }
 0x164   : > { %1219 = vst [vmem:[%s2345_s22 + $0x48] sm:$0xff] %v1203_v28  ;;  %v1189_v54 = vadd.f32 %v2339_v13, %v1166_v29  ;;  %v990_v55 = vmax.f32 %v812_v62, %v1643_v32  ;;  %v958_v56 = vpop.f32.mrb[29].mxu0  ;;  %v1699_v33 = vpop.f32.mrb[28].mxu1 }
 0x165   : > { %1218 = vst [vmem:[%s2345_s22 + $0x40] sm:$0xff] %v1202_v30  ;;  %v1188_v57 = vadd.f32 %v2339_v13, %v1165_v31  ;;  %v989_v58 = vmax.f32 %v811_v1, %v958_v56  ;;  %v1136_v59 = vpop.f32.mrb[29].mxu1 }
 0x166   : > { %v1205_v34 = vmax.f32 %v1189_v54, 0.0  ;;  %v1168_v35 = vmax.f32 %v990_v55, %v1699_v33 }
 0x167   : > { %v1204_v8 = vmax.f32 %v1188_v57, 0.0  ;;  %v1167_v9 = vmax.f32 %v989_v58, %v1136_v59  ;;  %v1646_v10 = vpop.f32.mrb[30].mxu0 }
 0x168   : > { %1221 = vst [vmem:[%s2345_s22 + $0x58] sm:$0xff] %v1205_v34  ;;  %v1191_v60 = vadd.f32 %v2339_v13, %v1168_v35  ;;  %v992_v61 = vmax.f32 %v814_v4, %v1646_v10  ;;  %v968_v62 = vpop.f32.mrb[31].mxu0  ;;  %v1702_v11 = vpop.f32.mrb[30].mxu1 }
 0x169   : > { %1220 = vst [vmem:[%s2345_s22 + $0x50] sm:$0xff] %v1204_v8  ;;  %v1190_v63 = vadd.f32 %v2339_v13, %v1167_v9  ;;  %v991_v0 = vmax.f32 %v813_v7, %v968_v62  ;;  %v1146_v1 = vpop.f32.mrb[31].mxu1 }
 0x16a   : > { %v1207_v12 = vmax.f32 %v1191_v60, 0.0  ;;  %v1170_v14 = vmax.f32 %v992_v61, %v1702_v11 }
 0x16b   : > { %v1206_v36 = vmax.f32 %v1190_v63, 0.0  ;;  %v1169_v37 = vmax.f32 %v991_v0, %v1146_v1 }
 0x16c   : > { %1223 = vst [vmem:[%s2345_s22 + $0x68] sm:$0xff] %v1207_v12  ;;  %v1193_v2 = vadd.f32 %v2339_v13, %v1170_v14 }
 0x16d   : > { %1222 = vst [vmem:[%s2345_s22 + $0x60] sm:$0xff] %v1206_v36  ;;  %v1192_v3 = vadd.f32 %v2339_v13, %v1169_v37 }
 0x16e   : > { %v1209_v4 = vmax.f32 %v1193_v2, 0.0 }
 0x16f   : > { %v1208_v38 = vmax.f32 %v1192_v3, 0.0 }
 0x170   : > { %1225 = vst [vmem:[%s2345_s22 + $0x78] sm:$0xff] %v1209_v4 }
 0x171   : > { %1224 = vst [vmem:[%s2345_s22 + $0x70] sm:$0xff] %v1208_v38 }
 0x172 PF: > { %p10_p9 = scmp.ge.s32.totalorder %s1916_s16, 5   ;;  %s2428_s12 = smov %s1873_s13 }
 0x173   : > { %s2429_s13 = smov %s1925_s19  ;;  %s2430_s14 = smov %s1916_s16 }
 0x174   :  { %12 = sbr.rel (!%p10_p9) target bundleno = 2 (0x2), region = 108 }

// kernel: forward.4
= control target key start
LH: loop header
LB: loop body
LE: loop exit
PB: predicated region body
PF: predicated region fallthrough
CT: control target
= control target key end

     0   :  { %s968_s1 = inlined_call_operand.vmem [shape: f32[128,128], index: 1, kind: input, shape index: {}]   ;;  %s969_s0 = inlined_call_operand.vmem [shape: f32[4,32,128], index: 0, kind: input, shape index: {}]   ;;  %s970_s2 = inlined_call_operand.vmem [shape: f32[1,128], index: 2, kind: input, shape index: {}]   ;;  %s971_s3 = inlined_call_operand.vmem [shape: f32[32,128], index: 3, kind: output, shape index: {}]  }
   0x1   :  { %v14_v0 = vld [vmem:[%s968_s1] sm:$0xff]  ;;  %v15_v1 = vld [vmem:[%s968_s1 + $0x8] sm:$0xff]  ;;  %v16_v2 = vld [vmem:[%s968_s1 + $0x10] sm:$0xff] }
   0x2   :  { %v826_v3 = vpack.c.bf16 %v15_v1, %v14_v0  ;;  %v17_v4 = vld [vmem:[%s968_s1 + $0x18] sm:$0xff]  ;;  %v18_v6 = vld [vmem:[%s968_s1 + $0x20] sm:$0xff]  ;;  %v19_v7 = vld [vmem:[%s968_s1 + $0x28] sm:$0xff] }
   0x3   :  { %v831_v5 = vpack.c.bf16 %v17_v4, %v16_v2  ;;  %v845_v8 = vpack.c.bf16 %v19_v7, %v18_v6  ;;  %v30_v9 = vld [vmem:[%s969_s0] sm:$0xff]  ;;  %v20_v11 = vld [vmem:[%s968_s1 + $0x30] sm:$0xff]  ;;  %v21_v12 = vld [vmem:[%s968_s1 + $0x38] sm:$0xff] }
   0x4   :  { %670 = vmatprep.subr.bf16.mxu0 %v826_v3  ;;  %702 = vmatprep.subr.bf16.mxu1 %v826_v3  ;;  %v424_v10 = vld [vmem:[%s969_s0 + $0x20] sm:$0xff]  ;;  %v863_v13 = vpack.c.bf16 %v21_v12, %v20_v11  ;;  %v23_v15 = vld [vmem:[%s968_s1 + $0x48] sm:$0xff]  ;;  %v24_v17 = vld [vmem:[%s968_s1 + $0x50] sm:$0xff] }
   0x5   :  { %672 = vmatpush3.bf16.msra.mxu0 %v826_v3  ;;  %704 = vmatpush3.bf16.msra.mxu1 %v826_v3  ;;  %v22_v14 = vld [vmem:[%s968_s1 + $0x40] sm:$0xff]  ;;  %v25_v18 = vld [vmem:[%s968_s1 + $0x58] sm:$0xff]  ;;  %v27_v21 = vld [vmem:[%s968_s1 + $0x68] sm:$0xff] }
   0x6   :  { %674 = vmatprep.subr.bf16.mxu0 %v831_v5  ;;  %706 = vmatprep.subr.bf16.mxu1 %v831_v5  ;;  %v685_v16 = vpack.c.bf16 %v23_v15, %v22_v14  ;;  %v689_v19 = vpack.c.bf16 %v25_v18, %v24_v17  ;;  %v26_v20 = vld [vmem:[%s968_s1 + $0x60] sm:$0xff]  ;;  %v28_v23 = vld [vmem:[%s968_s1 + $0x70] sm:$0xff]  ;;  %v29_v24 = vld [vmem:[%s968_s1 + $0x78] sm:$0xff] }
   0x7   :  { %549 = vmatprep.mubr.f32.mxu0 %v30_v9  ;;  %587 = vmatprep.mubr.f32.mxu1 %v424_v10  ;;  %v693_v22 = vpack.c.bf16 %v27_v21, %v26_v20  ;;  %v697_v25 = vpack.c.bf16 %v29_v24, %v28_v23  ;;  %v31_v26 = vld [vmem:[%s969_s0 + $0x8] sm:$0xff]  ;;  %v32_v28 = vld [vmem:[%s969_s0 + $0x10] sm:$0xff]  ;;  %v33_v30 = vld [vmem:[%s969_s0 + $0x18] sm:$0xff] }
   0x8   :  { %v425_v27 = vld [vmem:[%s969_s0 + $0x28] sm:$0xff]  ;;  %v426_v29 = vld [vmem:[%s969_s0 + $0x30] sm:$0xff]  ;;  %v427_v31 = vld [vmem:[%s969_s0 + $0x38] sm:$0xff] }
   0x9   :  { %676 = vmatpush3.bf16.msra.mxu0 %v831_v5  ;;  %708 = vmatpush3.bf16.msra.mxu1 %v831_v5  ;;  %v428_v32 = vld [vmem:[%s969_s0 + $0x40] sm:$0xff]  ;;  %v429_v34 = vld [vmem:[%s969_s0 + $0x48] sm:$0xff]  ;;  %v430_v36 = vld [vmem:[%s969_s0 + $0x50] sm:$0xff] }
   0xa   :  { %678 = vmatprep.subr.bf16.mxu0 %v845_v8  ;;  %710 = vmatprep.subr.bf16.mxu1 %v845_v8  ;;  %v432_v33 = vld [vmem:[%s969_s0 + $0x60] sm:$0xff]  ;;  %v433_v35 = vld [vmem:[%s969_s0 + $0x68] sm:$0xff]  ;;  %v434_v37 = vld [vmem:[%s969_s0 + $0x70] sm:$0xff] }
   0xb   :  { %v431_v38 = vld [vmem:[%s969_s0 + $0x58] sm:$0xff]  ;;  %v436_v58 = vld [vmem:[%s970_s2] ss:$0 sm:$0xff] }
   0xc   :  { %v435_v39 = vld [vmem:[%s969_s0 + $0x78] sm:$0xff] }
   0xd   :  { %680 = vmatpush3.bf16.msra.mxu0 %v845_v8  ;;  %712 = vmatpush3.bf16.msra.mxu1 %v845_v8 }
   0xe   :  { %682 = vmatprep.subr.bf16.mxu0 %v863_v13  ;;  %714 = vmatprep.subr.bf16.mxu1 %v863_v13 }
  0x11   :  { %684 = vmatpush3.bf16.msra.mxu0 %v863_v13  ;;  %716 = vmatpush3.bf16.msra.mxu1 %v863_v13 }
  0x12   :  { %686 = vmatprep.subr.bf16.mxu0 %v685_v16  ;;  %718 = vmatprep.subr.bf16.mxu1 %v685_v16 }
  0x15   :  { %688 = vmatpush3.bf16.msra.mxu0 %v685_v16  ;;  %720 = vmatpush3.bf16.msra.mxu1 %v685_v16 }
  0x16   :  { %690 = vmatprep.subr.bf16.mxu0 %v689_v19  ;;  %722 = vmatprep.subr.bf16.mxu1 %v689_v19 }
  0x19   :  { %692 = vmatpush3.bf16.msra.mxu0 %v689_v19  ;;  %724 = vmatpush3.bf16.msra.mxu1 %v689_v19 }
  0x1a   :  { %694 = vmatprep.subr.bf16.mxu0 %v693_v22  ;;  %726 = vmatprep.subr.bf16.mxu1 %v693_v22 }
  0x1d   :  { %696 = vmatpush3.bf16.msra.mxu0 %v693_v22  ;;  %728 = vmatpush3.bf16.msra.mxu1 %v693_v22 }
  0x1e   :  { %698 = vmatprep.subr.bf16.mxu0 %v697_v25  ;;  %730 = vmatprep.subr.bf16.mxu1 %v697_v25 }
  0x21   :  { %700 = vmatpush3.bf16.msra.mxu0 %v697_v25  ;;  %732 = vmatpush3.bf16.msra.mxu1 %v697_v25 }
  0x22   :  { %734 = vmatprep.subr.bf16.mxu0 %v826_v3  ;;  %766 = vmatprep.subr.bf16.mxu1 %v826_v3 }
  0x24   :  { %550 = vmatmul.mubr.f32.vlgmr.msra.gmra.mrb[0].mxu0 %v31_v26  ;;  %588 = vmatmul.mubr.f32.vlgmr.msra.gmra.mrb[0].mxu1 %v425_v27 }
  0x25   :  { %736 = vmatpush3.bf16.msra.mxu0 %v826_v3  ;;  %768 = vmatpush3.bf16.msra.mxu1 %v826_v3 }
  0x26   :  { %738 = vmatprep.subr.bf16.mxu0 %v831_v5  ;;  %770 = vmatprep.subr.bf16.mxu1 %v831_v5 }
  0x27   :  { %552 = vmatprep.mubr.f32.mxu0 %v32_v28  ;;  %590 = vmatprep.mubr.f32.mxu1 %v426_v29 }
  0x28   :  { %553 = vmatmul.mubr.f32.gmra.mrb[2].mxu0 %v33_v30  ;;  %591 = vmatmul.mubr.f32.gmra.mrb[2].mxu1 %v427_v31 }
  0x29   :  { %740 = vmatpush3.bf16.msra.mxu0 %v831_v5  ;;  %772 = vmatpush3.bf16.msra.mxu1 %v831_v5 }
  0x2a   :  { %742 = vmatprep.subr.bf16.mxu0 %v845_v8  ;;  %774 = vmatprep.subr.bf16.mxu1 %v845_v8 }
  0x2b   :  { %625 = vmatprep.mubr.f32.mxu0 %v428_v32  ;;  %663 = vmatprep.mubr.f32.mxu1 %v432_v33 }
  0x2d   :  { %744 = vmatpush3.bf16.msra.mxu0 %v845_v8  ;;  %776 = vmatpush3.bf16.msra.mxu1 %v845_v8 }
  0x2e   :  { %746 = vmatprep.subr.bf16.mxu0 %v863_v13  ;;  %778 = vmatprep.subr.bf16.mxu1 %v863_v13 }
  0x31   :  { %748 = vmatpush3.bf16.msra.mxu0 %v863_v13  ;;  %780 = vmatpush3.bf16.msra.mxu1 %v863_v13 }
  0x32   :  { %750 = vmatprep.subr.bf16.mxu0 %v685_v16  ;;  %782 = vmatprep.subr.bf16.mxu1 %v685_v16 }
  0x35   :  { %752 = vmatpush3.bf16.msra.mxu0 %v685_v16  ;;  %784 = vmatpush3.bf16.msra.mxu1 %v685_v16 }
  0x36   :  { %754 = vmatprep.subr.bf16.mxu0 %v689_v19  ;;  %786 = vmatprep.subr.bf16.mxu1 %v689_v19 }
  0x39   :  { %756 = vmatpush3.bf16.msra.mxu0 %v689_v19  ;;  %788 = vmatpush3.bf16.msra.mxu1 %v689_v19 }
  0x3a   :  { %758 = vmatprep.subr.bf16.mxu0 %v693_v22  ;;  %790 = vmatprep.subr.bf16.mxu1 %v693_v22 }
  0x3d   :  { %760 = vmatpush3.bf16.msra.mxu0 %v693_v22  ;;  %792 = vmatpush3.bf16.msra.mxu1 %v693_v22 }
  0x3e   :  { %762 = vmatprep.subr.bf16.mxu0 %v697_v25  ;;  %794 = vmatprep.subr.bf16.mxu1 %v697_v25 }
  0x41   :  { %764 = vmatpush3.bf16.msra.mxu0 %v697_v25  ;;  %796 = vmatpush3.bf16.msra.mxu1 %v697_v25 }
  0x44   :  { %626 = vmatmul.mubr.f32.vlgmr.msra.gmra.mrb[4].mxu0 %v429_v34  ;;  %664 = vmatmul.mubr.f32.vlgmr.msra.gmra.mrb[4].mxu1 %v433_v35 }
  0x45   :  { %628 = vmatprep.mubr.f32.mxu0 %v430_v36  ;;  %666 = vmatprep.mubr.f32.mxu1 %v434_v37 }
  0x48   :  { %629 = vmatmul.mubr.f32.gmra.mrb[6].mxu0 %v431_v38  ;;  %667 = vmatmul.mubr.f32.gmra.mrb[6].mxu1 %v435_v39 }
  0xf7   :  { %v551_v40 = vpop.f32.mrb[0].mxu0  ;;  %v589_v41 = vpop.f32.mrb[0].mxu1 }
  0xf8   :  { %v210_v42 = vmax.f32 %v551_v40, %v589_v41  ;;  %v100_v43 = vpop.f32.mrb[1].mxu0  ;;  %v190_v44 = vpop.f32.mrb[1].mxu1 }
  0xf9   :  { %v209_v45 = vmax.f32 %v100_v43, %v190_v44 }
  0xfb   :  { %v554_v46 = vpop.f32.mrb[2].mxu0  ;;  %v592_v47 = vpop.f32.mrb[2].mxu1 }
  0xfc   :  { %v212_v48 = vmax.f32 %v554_v46, %v592_v47  ;;  %v110_v49 = vpop.f32.mrb[3].mxu0  ;;  %v200_v50 = vpop.f32.mrb[3].mxu1 }
  0xfd   :  { %v211_v51 = vmax.f32 %v110_v49, %v200_v50 }
 0x117   :  { %v627_v52 = vpop.f32.mrb[4].mxu0  ;;  %v665_v53 = vpop.f32.mrb[4].mxu1 }
 0x118   :  { %v304_v54 = vmax.f32 %v210_v42, %v627_v52  ;;  %v284_v55 = vpop.f32.mrb[5].mxu0  ;;  %v378_v56 = vpop.f32.mrb[5].mxu1 }
 0x119   :  { %v303_v57 = vmax.f32 %v209_v45, %v284_v55 }
 0x11a   :  { %v398_v59 = vmax.f32 %v304_v54, %v665_v53 }
 0x11b   :  { %v397_v60 = vmax.f32 %v303_v57, %v378_v56  ;;  %v630_v61 = vpop.f32.mrb[6].mxu0  ;;  %v668_v62 = vpop.f32.mrb[6].mxu1 }
 0x11c   :  { %v409_v63 = vadd.f32 %v436_v58, %v398_v59  ;;  %v306_v0 = vmax.f32 %v212_v48, %v630_v61  ;;  %v294_v1 = vpop.f32.mrb[7].mxu0  ;;  %v388_v2 = vpop.f32.mrb[7].mxu1 }
 0x11d   :  { %v408_v3 = vadd.f32 %v436_v58, %v397_v60  ;;  %v305_v4 = vmax.f32 %v211_v51, %v294_v1 }
 0x11e   :  { %v413_v5 = vmax.f32 %v409_v63, 0.0  ;;  %v400_v6 = vmax.f32 %v306_v0, %v668_v62 }
 0x11f   :  { %v412_v7 = vmax.f32 %v408_v3, 0.0  ;;  %v399_v8 = vmax.f32 %v305_v4, %v388_v2 }
 0x120   :  { %417 = vst [vmem:[%s971_s3 + $0x8] sm:$0xff] %v413_v5  ;;  %v411_v9 = vadd.f32 %v436_v58, %v400_v6 }
 0x121   :  { %416 = vst [vmem:[%s971_s3] sm:$0xff] %v412_v7  ;;  %v410_v10 = vadd.f32 %v436_v58, %v399_v8 }
 0x122   :  { %v415_v11 = vmax.f32 %v411_v9, 0.0 }
 0x123   :  { %v414_v12 = vmax.f32 %v410_v10, 0.0 }
 0x124   :  { %419 = vst [vmem:[%s971_s3 + $0x18] sm:$0xff] %v415_v11 }
 0x125   :  { %418 = vst [vmem:[%s971_s3 + $0x10] sm:$0xff] %v414_v12 }

// kernel: forward.5
= control target key start
LH: loop header
LB: loop body
LE: loop exit
PB: predicated region body
PF: predicated region fallthrough
CT: control target
= control target key end

     0   :  { %v396_v3 = vmov 0.0|0.0   ;;  %vm397_vm0 = vmmov 0   ;;  %s596_s1 = inlined_call_operand.vmem [shape: f32[256,128], index: 1, kind: input, shape index: {}]   ;;  %s597_s0 = inlined_call_operand.vmem [shape: f32[8,256], index: 0, kind: input, shape index: {}]   ;;  %s598_s3 = inlined_call_operand.vmem [shape: f32[128,128], index: 3, kind: input, shape index: {}]   ;;  %s599_s2 = inlined_call_operand.vmem [shape: f32[1,128], index: 2, kind: input, shape index: {}]   ;;  %s600_s4 = inlined_call_operand.vmem [shape: f32[1,128], index: 4, kind: input, shape index: {}]   ;;  %s601_s5 = inlined_call_operand.vmem [shape: f32[8,128], index: 5, kind: output, shape index: {}]  }
   0x1   :  { %v38_v0 = vld [vmem:[%s596_s1 + $0x80] sm:$0xff]  ;;  %v39_v1 = vld [vmem:[%s596_s1 + $0x88] sm:$0xff]  ;;  %365 = vmatprep.subr.bf16.mxu1 %v396_v3  ;;  %v40_v6 = vld [vmem:[%s596_s1 + $0x90] sm:$0xff] }
   0x2   :  { %v22_v2 = vld [vmem:[%s596_s1] sm:$0xff]  ;;  %v333_v4 = vpack.c.bf16 %v39_v1, %v38_v0  ;;  %v23_v5 = vld [vmem:[%s596_s1 + $0x8] sm:$0xff]  ;;  %v41_v7 = vld [vmem:[%s596_s1 + $0x98] sm:$0xff] }
   0x3   :  { %v335_v8 = vpack.c.bf16 %v23_v5, %v22_v2  ;;  %v337_v9 = vpack.c.bf16 %v41_v7, %v40_v6  ;;  %v24_v10 = vld [vmem:[%s596_s1 + $0x10] sm:$0xff]  ;;  %v25_v11 = vld [vmem:[%s596_s1 + $0x18] sm:$0xff]  ;;  %v42_v12 = vld [vmem:[%s596_s1 + $0xa0] sm:$0xff] }
   0x4   :  { %334 = vmatprep.subr.bf16.mxu0 %v333_v4  ;;  %v43_v13 = vld [vmem:[%s596_s1 + $0xa8] sm:$0xff]  ;;  %v339_v14 = vpack.c.bf16 %v25_v11, %v24_v10  ;;  %v26_v16 = vld [vmem:[%s596_s1 + $0x20] sm:$0xff]  ;;  %v44_v18 = vld [vmem:[%s596_s1 + $0xb0] sm:$0xff] }
   0x5   :  { %336 = vmatpush3.bf16.msra.mxu0 %v335_v8  ;;  %v341_v15 = vpack.c.bf16 %v43_v13, %v42_v12  ;;  %v27_v17 = vld [vmem:[%s596_s1 + $0x28] sm:$0xff]  ;;  %v45_v19 = vld [vmem:[%s596_s1 + $0xb8] sm:$0xff]  ;;  %v28_v22 = vld [vmem:[%s596_s1 + $0x30] sm:$0xff]  ;;  %v398_v12 = vmov 0.0  }
   0x6   :  { %338 = vmatprep.subr.bf16.mxu0 %v337_v9  ;;  %v343_v20 = vpack.c.bf16 %v27_v17, %v26_v16  ;;  %v345_v21 = vpack.c.bf16 %v45_v19, %v44_v18  ;;  %v29_v23 = vld [vmem:[%s596_s1 + $0x38] sm:$0xff]  ;;  %v46_v24 = vld [vmem:[%s596_s1 + $0xc0] sm:$0xff]  ;;  %v47_v25 = vld [vmem:[%s596_s1 + $0xc8] sm:$0xff]  ;;  %330 = vmatprep.mubr.msk.f32.mxu1 %vm397_vm0, %v398_v12  ;;  %v225_v18 = vlaneseq }
   0x7   :  { %v21_v26 = vld [vmem:[%s597_s0 + $0x8] sm:$0xff]  ;;  %v132_v27 = vld [vmem:[%s598_s3] sm:$0xff]  ;;  %v347_v29 = vpack.c.bf16 %v29_v23, %v28_v22  ;;  %v134_v31 = vld [vmem:[%s598_s3 + $0x10] sm:$0xff]  ;;  %v349_v33 = vpack.c.bf16 %v47_v25, %v46_v24 }
   0x8   :  { %125 = vmatprep.mubr.f32.mxu0 %v21_v26  ;;  %v133_v28 = vld [vmem:[%s598_s3 + $0x8] sm:$0xff]  ;;  %v135_v32 = vld [vmem:[%s598_s3 + $0x18] sm:$0xff]  ;;  %v30_v34 = vld [vmem:[%s596_s1 + $0x40] sm:$0xff]  ;;  %v226_v19 = vand.u32 127, %v225_v18 }
   0x9   :  { %340 = vmatpush3.bf16.msra.mxu0 %v339_v14  ;;  %v366_v30 = vpack.c.bf16 %v133_v28, %v132_v27  ;;  %v31_v35 = vld [vmem:[%s596_s1 + $0x48] sm:$0xff]  ;;  %v48_v36 = vld [vmem:[%s596_s1 + $0xd0] sm:$0xff]  ;;  %v49_v37 = vld [vmem:[%s596_s1 + $0xd8] sm:$0xff]  ;;  %v369_v38 = vpack.c.bf16 %v135_v32, %v134_v31 }
   0xa   :  { %342 = vmatprep.subr.bf16.mxu0 %v341_v15  ;;  %v136_v39 = vld [vmem:[%s598_s3 + $0x20] sm:$0xff]  ;;  %v137_v40 = vld [vmem:[%s598_s3 + $0x28] sm:$0xff]  ;;  %v351_v41 = vpack.c.bf16 %v31_v35, %v30_v34  ;;  %v353_v42 = vpack.c.bf16 %v49_v37, %v48_v36  ;;  %v32_v43 = vld [vmem:[%s596_s1 + $0x50] sm:$0xff]  ;;  %vm227_vm1 = vcmp.lt.s32.totalorder %v226_v19, 10 }
   0xb   :  { %367 = vmatpush3.bf16.msra.mxu1 %v366_v30  ;;  %v33_v44 = vld [vmem:[%s596_s1 + $0x58] sm:$0xff]  ;;  %v50_v45 = vld [vmem:[%s596_s1 + $0xe0] sm:$0xff]  ;;  %v51_v46 = vld [vmem:[%s596_s1 + $0xe8] sm:$0xff]  ;;  %v372_v47 = vpack.c.bf16 %v137_v40, %v136_v39 }
   0xc   :  { %368 = vmatprep.subr.bf16.mxu1 %v396_v3  ;;  %v138_v48 = vld [vmem:[%s598_s3 + $0x30] sm:$0xff]  ;;  %v139_v49 = vld [vmem:[%s598_s3 + $0x38] sm:$0xff]  ;;  %v355_v50 = vpack.c.bf16 %v33_v44, %v32_v43  ;;  %v357_v51 = vpack.c.bf16 %v51_v46, %v50_v45  ;;  %v34_v52 = vld [vmem:[%s596_s1 + $0x60] sm:$0xff] }
   0xd   :  { %344 = vmatpush3.bf16.msra.mxu0 %v343_v20  ;;  %v35_v53 = vld [vmem:[%s596_s1 + $0x68] sm:$0xff]  ;;  %v52_v54 = vld [vmem:[%s596_s1 + $0xf0] sm:$0xff]  ;;  %v53_v55 = vld [vmem:[%s596_s1 + $0xf8] sm:$0xff]  ;;  %v375_v56 = vpack.c.bf16 %v139_v49, %v138_v48 }
   0xe   :  { %346 = vmatprep.subr.bf16.mxu0 %v345_v21  ;;  %v140_v57 = vld [vmem:[%s598_s3 + $0x40] sm:$0xff]  ;;  %v141_v58 = vld [vmem:[%s598_s3 + $0x48] sm:$0xff]  ;;  %v359_v59 = vpack.c.bf16 %v35_v53, %v34_v52  ;;  %v361_v60 = vpack.c.bf16 %v53_v55, %v52_v54  ;;  %v36_v61 = vld [vmem:[%s596_s1 + $0x70] sm:$0xff] }
   0xf   :  { %370 = vmatpush3.bf16.msra.mxu1 %v369_v38  ;;  %v37_v62 = vld [vmem:[%s596_s1 + $0x78] sm:$0xff]  ;;  %v378_v63 = vpack.c.bf16 %v141_v58, %v140_v57  ;;  %v142_v0 = vld [vmem:[%s598_s3 + $0x50] sm:$0xff]  ;;  %v20_v5 = vld [vmem:[%s597_s0] sm:$0xff] }
  0x10   :  { %371 = vmatprep.subr.bf16.mxu1 %v396_v3  ;;  %v143_v1 = vld [vmem:[%s598_s3 + $0x58] sm:$0xff]  ;;  %v363_v2 = vpack.c.bf16 %v37_v62, %v36_v61  ;;  %v144_v6 = vld [vmem:[%s598_s3 + $0x60] sm:$0xff]  ;;  %v145_v7 = vld [vmem:[%s598_s3 + $0x68] sm:$0xff] }
  0x11   :  { %348 = vmatpush3.bf16.msra.mxu0 %v347_v29  ;;  %v381_v4 = vpack.c.bf16 %v143_v1, %v142_v0  ;;  %v384_v8 = vpack.c.bf16 %v145_v7, %v144_v6  ;;  %v146_v9 = vld [vmem:[%s598_s3 + $0x70] sm:$0xff]  ;;  %v147_v10 = vld [vmem:[%s598_s3 + $0x78] sm:$0xff]  ;;  %v244_v14 = vld [vmem:[%s599_s2] ss:$0 sm:$0xff] }
  0x12   :  { %350 = vmatprep.subr.bf16.mxu0 %v349_v33  ;;  %v387_v11 = vpack.c.bf16 %v147_v10, %v146_v9  ;;  %v245_v20 = vld [vmem:[%s600_s4] ss:$0 sm:$0xff] }
  0x13   :  { %373 = vmatpush3.bf16.msra.mxu1 %v372_v47 }
  0x14   :  { %374 = vmatprep.subr.bf16.mxu1 %v396_v3 }
  0x15   :  { %352 = vmatpush3.bf16.msra.mxu0 %v351_v41 }
  0x16   :  { %354 = vmatprep.subr.bf16.mxu0 %v353_v42 }
  0x17   :  { %376 = vmatpush3.bf16.msra.mxu1 %v375_v56 }
  0x18   :  { %377 = vmatprep.subr.bf16.mxu1 %v396_v3 }
  0x19   :  { %356 = vmatpush3.bf16.msra.mxu0 %v355_v50 }
  0x1a   :  { %358 = vmatprep.subr.bf16.mxu0 %v357_v51 }
  0x1b   :  { %379 = vmatpush3.bf16.msra.mxu1 %v378_v63 }
  0x1c   :  { %380 = vmatprep.subr.bf16.mxu1 %v396_v3 }
  0x1d   :  { %360 = vmatpush3.bf16.msra.mxu0 %v359_v59 }
  0x1e   :  { %362 = vmatprep.subr.bf16.mxu0 %v361_v60 }
  0x1f   :  { %382 = vmatpush3.bf16.msra.mxu1 %v381_v4 }
  0x20   :  { %383 = vmatprep.subr.bf16.mxu1 %v396_v3 }
  0x21   :  { %364 = vmatpush3.bf16.msra.mxu0 %v363_v2 }
  0x23   :  { %385 = vmatpush3.bf16.msra.mxu1 %v384_v8 }
  0x24   :  { %126 = vmatmul.mubr.f32.vlgmr.msra.gmra.mrb[0].mxu0 %v20_v5  ;;  %386 = vmatprep.subr.bf16.mxu1 %v396_v3 }
  0x27   :  { %388 = vmatpush3.bf16.msra.mxu1 %v387_v11 }
  0xf7   :  { %v278_v13 = vpop.f32.mrb[0].mxu0 }
  0xf8   :  { %v279_v15 = vpop.f32.mrb[1].mxu0 }
  0xf9   :  { %v280_v3 = vadd.f32 %v279_v15, %v278_v13 }
  0xfb   :  { %v128_v16 = vadd.f32 %v280_v3, %v244_v14 }
  0xfd   :  { %v131_v17 = vmax.f32 %v128_v16, 0.0 }
  0xff   :  { %331 = vmatmul.mubr.f32.vlgmr.msra.gmra.mrb[0].mxu1 %v131_v17 }
 0x1d2   :  { %v221_v21 = vpop.f32.mrb[0].mxu1 }
 0x1d3   :  { %v222_v22 = vadd.f32 %v245_v20, %v221_v21  ;;  %v332_v23 = vpop.f32.mrb[1].mxu1 }
 0x1d5   :  { %v228_v24 = vsel %vm227_vm1, %v222_v22, -1e+30 }
 0x1d6   :  { %229 = vmax.xlane.f32.xlu0 %v228_v24 }
 0x263   :  { %v230_v25 = vpop.xlane.xlu0 %229 }
 0x264   :  { %v231_v26 = vsub.f32 %v228_v24, %v230_v25 }
 0x266   :  { %v232_v27 = vmul.f32 1.442695, %v231_v26 }
 0x268   :  { %392 = vpow2.f32 %v232_v27 }
 0x272   :  { %v393_v28 = vpop.eup %392 }
 0x273   :  { %234 = vadd.xlane.f32.xlu0 %v393_v28 }
 0x300   :  { %v235_v29 = vpop.xlane.xlu0 %234 }
 0x301   :  { %394 = vlog2.f32 %v235_v29 }
 0x30b   :  { %v395_v30 = vpop.eup %394 }
 0x30c   :  { %v237_v31 = vmul.f32 0.6931472, %v395_v30 }
 0x30e   :  { %v238_v32 = vsub.f32 %v231_v26, %v237_v31 }
 0x310   :  { %239 = vst [vmem:[%s601_s5] sm:$0xff] %v238_v32 }

</bundles_post_ra>
